<compile_context>
chip_gen: v7x
topology: tpu7x:2x2x1
jax: 0.10.0
libtpu: 0.0.40
codegen_flags: <defaults>
</compile_context>

<pallas_src>
import functools

import jax
import jax.numpy as jnp
import numpy as np
from jax.experimental import pallas as pl
from jax.experimental.pallas import tpu as pltpu

BN_EPS = 1e-5


def _silu(z):
    # z * logistic(z): the transcendental goes to the EUP slot.
    return z * jax.lax.logistic(z)


# --------------------------------------------------------------------------
# Fused kernel: BayesianClassifier MLP + MCQA head.
# --------------------------------------------------------------------------
def _fused_kernel(x_ref, in_mean_ref, in_lv_ref, eps_in_ref,
                  out_mean_ref, out_lv_ref, eps_out_ref,
                  wh_t_ref, bh_ref, gamma_ref, beta_ref,
                  wm_t_ref, bm_ref, nctx_ref, ncho_ref,
                  scores_ref, w_in_ref, w_out_ref,
                  y_ref, *, nb_context, nb_choices, batch, num_layers,
                  score_pad):
    # ---- Bayesian weight sampling: w = mean + eps * exp(0.5 * log_var) ----
    w_in = in_mean_ref[...] + eps_in_ref[...] * jnp.exp(0.5 * in_lv_ref[...])
    w_out = out_mean_ref[...] + eps_out_ref[...] * jnp.exp(0.5 * out_lv_ref[...])
    w_in_ref[...] = w_in
    w_out_ref[...] = w_out

    # ---- MLP on all rows (slot-major row order; BN is order-invariant) ----
    h = _silu(jnp.dot(x_ref[...], w_in, preferred_element_type=jnp.float32))

    # Hoist the gamma/beta loads out of the layer loop.
    gamma = gamma_ref[...]
    beta = beta_ref[...]

    def batch_norm(h, idx):
        # training-mode BatchNorm1d, one-pass statistics + folded scale/shift
        m = jnp.mean(h, axis=0, keepdims=True)
        ms = jnp.mean(h * h, axis=0, keepdims=True)
        var = ms - m * m
        scale = gamma[idx:idx + 1, :] * jax.lax.rsqrt(var + BN_EPS)
        shift = beta[idx:idx + 1, :] - m * scale
        return h * scale + shift

    h = batch_norm(h, 0)
    # num_layers is small (3): static unroll.
    # TODO(synk): switch to lax.fori_loop(..., unroll=True) if num_layers > ~4
    for i in range(num_layers):
        z = jnp.dot(h, wh_t_ref[i], preferred_element_type=jnp.float32) \
            + bh_ref[i:i + 1, :]
        h = _silu(z) + h
        h = batch_norm(h, i + 1)

    # Output projection stays in VMEM scratch (no HBM write-back of y).
    y_ref[...] = jnp.dot(h, w_out, preferred_element_type=jnp.float32)

    # ---- MCQA head: context merger + jitter + L2 normalize + cosine ----
    # context_merger(context.view(B, nc*H)) == sum_c ctx_c @ wm_t[c] + bm
    merged = jnp.dot(y_ref[pl.ds(0, batch), :], wm_t_ref[0],
                     preferred_element_type=jnp.float32)
    for c in range(1, nb_context):
        merged = merged + jnp.dot(y_ref[pl.ds(c * batch, batch), :],
                                  wm_t_ref[c],
                                  preferred_element_type=jnp.float32)
    ctx = _silu(merged + bm_ref[...]) + nctx_ref[...]          # (batch, H)
    ctx = ctx * jax.lax.rsqrt(jnp.sum(ctx * ctx, axis=-1, keepdims=True))

    # Lane-dense (batch, score_pad) scores slab assembled with an iota mask so
    # the final store is a full-lane unmasked vst.
    col = jax.lax.broadcasted_iota(jnp.int32, (batch, score_pad), 1)
    scores = jnp.zeros((batch, score_pad), jnp.float32)
    for j in range(nb_choices):
        cho = y_ref[pl.ds((nb_context + j) * batch, batch), :] + ncho_ref[j]
        cho = cho * jax.lax.rsqrt(jnp.sum(cho * cho, axis=-1, keepdims=True))
        s_j = jnp.sum(ctx * cho, axis=-1, keepdims=True)       # (batch, 1)
        scores = jnp.where(col == j, s_j, scores)
    scores_ref[...] = scores


# --------------------------------------------------------------------------
# One-time parameter preparation (transposes done once, not per call).
# --------------------------------------------------------------------------
def prepare_params(params, nb_context, hidden_dim):
    H = hidden_dim
    prep = dict(params)
    # torch Linear computes x @ W.T; pre-transpose once.
    prep["wh_t"] = jnp.transpose(params["wh"], (0, 2, 1))           # (L, H, H)
    prep["wm_t"] = params["wm"].T.reshape(nb_context, H, H)         # (nc, H, H)
    prep["bm2"] = params["bm"].reshape(1, H)
    return prep


# --------------------------------------------------------------------------
# Wrapper
# --------------------------------------------------------------------------
def mcqa_bayes_classifier(prep, x, eps_in, eps_out, noise_ctx, noise_cho,
                          nb_context, nb_choices, hidden_dim):
    assert nb_context > 1, "only the (default) nb_context > 1 path is built"
    batch = x.shape[0]
    single = prep["in_mean"].shape[0]
    H = hidden_dim
    G = nb_context + nb_choices
    n_rows = batch * G
    score_pad = max(128, int(pl.cdiv(nb_choices, 128)) * 128)

    # Slot-major row order: row (c*batch + b) == slot c of batch b, so the
    # head reads contiguous (batch, H) slabs. BN/MLP are row-order invariant.
    x_sm = jnp.transpose(x.reshape(batch, G, single), (1, 0, 2)) \
              .reshape(n_rows, single)
    ncho_sm = jnp.transpose(noise_cho, (1, 0, 2))                  # (nch, B, H)
    nctx2 = noise_ctx.reshape(batch, H)

    vmem = pl.BlockSpec(memory_space=pltpu.MemorySpace.VMEM)

    kernel = functools.partial(
        _fused_kernel, nb_context=nb_context, nb_choices=nb_choices,
        batch=batch, num_layers=prep["wh_t"].shape[0], score_pad=score_pad)

    inputs = (x_sm, prep["in_mean"], prep["in_logvar"], eps_in,
              prep["out_mean"], prep["out_logvar"], eps_out,
              prep["wh_t"], prep["bh"], prep["gamma"], prep["beta"],
              prep["wm_t"], prep["bm2"], nctx2, ncho_sm)

    # Explicit VMEM budget (fully-resident design; matters most on v7x/64MiB).
    in_bytes = sum(int(np.prod(a.shape)) * a.dtype.itemsize for a in inputs)
    out_scr_bytes = (batch * score_pad + single * H + H * H + n_rows * H) * 4
    vmem_limit = int(min(max(4 * (in_bytes + out_scr_bytes), 32 << 20),
                         48 << 20))

    scores_pad, w_in, w_out = pl.pallas_call(
        kernel,
        out_shape=(jax.ShapeDtypeStruct((batch, score_pad), jnp.float32),
                   jax.ShapeDtypeStruct((single, H), jnp.float32),
                   jax.ShapeDtypeStruct((H, H), jnp.float32)),
        in_specs=[vmem] * len(inputs),
        out_specs=(vmem, vmem, vmem),
        scratch_shapes=[pltpu.VMEM((n_rows, H), jnp.float32)],
        compiler_params=pltpu.CompilerParams(vmem_limit_bytes=vmem_limit),
    )(*inputs)

    return scores_pad[:, :nb_choices], w_in, w_out


# --------------------------------------------------------------------------
# Pure-JAX reference (mirrors the torch forward semantics)
# --------------------------------------------------------------------------
def reference(params, x, eps_in, eps_out, noise_ctx, noise_cho,
              nb_context, nb_choices, H):
    single = params["in_mean"].shape[0]
    batch = x.shape[0]
    xf = x.reshape(-1, single)
    w_in = params["in_mean"] + eps_in * jnp.exp(0.5 * params["in_logvar"])
    w_out = params["out_mean"] + eps_out * jnp.exp(0.5 * params["out_logvar"])

    def bn(h, g, b):
        m = h.mean(0)
        v = ((h - m) ** 2).mean(0)
        return (h - m) / jnp.sqrt(v + BN_EPS) * g + b

    h = jax.nn.silu(xf @ w_in)
    h = bn(h, params["gamma"][0], params["beta"][0])
    for i in range(params["wh"].shape[0]):
        h = jax.nn.silu(h @ params["wh"][i].T + params["bh"][i]) + h
        h = bn(h, params["gamma"][i + 1], params["beta"][i + 1])
    y = h @ w_out

    y = y.reshape(batch, nb_context + nb_choices, H)
    ctx = y[:, :nb_context, :].reshape(batch, -1)
    cho = y[:, nb_context:, :]
    ctx = jax.nn.silu(ctx @ params["wm"].T + params["bm"])[:, None, :]
    ctx = ctx + noise_ctx
    cho = cho + noise_cho
    ctx = ctx / jnp.linalg.norm(ctx, axis=-1, keepdims=True)
    cho = cho / jnp.linalg.norm(cho, axis=-1, keepdims=True)
    scores = jnp.einsum("bqd,bkd->bqk", ctx, cho).reshape(batch, nb_choices)
    return scores, w_in, w_out


if __name__ == "__main__":
    # Small config: hidden_dim=32, num_layers=3, nb_context=4, nb_choices=4,
    # single_input_size=16  =>  in_dim = 16 * 8 = 128, batch = 2.
    batch = 2
    H = 32
    L = 3
    nb_context = 4
    nb_choices = 4
    S = 16                       # single_input_size
    in_dim = S * (nb_context + nb_choices)

    key = jax.random.PRNGKey(0)
    ks = jax.random.split(key, 14)

    def uni(k, shape, fan_in):
        bound = 1.0 / np.sqrt(fan_in)
        return jax.random.uniform(k, shape, jnp.float32, -bound, bound)

    params = {
        "in_mean":    jax.random.normal(ks[0], (S, H), jnp.float32),
        "in_logvar":  jax.random.normal(ks[1], (S, H), jnp.float32),
        "out_mean":   jax.random.normal(ks[2], (H, H), jnp.float32),
        "out_logvar": jax.random.normal(ks[3], (H, H), jnp.float32),
        "wh": uni(ks[4], (L, H, H), H),          # torch Linear weight (out, in)
        "bh": uni(ks[5], (L, H), H),
        "gamma": jnp.ones((L + 1, H), jnp.float32),   # BN weight init = 1
        "beta":  jnp.zeros((L + 1, H), jnp.float32),  # BN bias init = 0
        "wm": uni(ks[6], (H, nb_context * H), nb_context * H),
        "bm": uni(ks[7], (H,), nb_context * H),
    }

    x = jax.random.normal(ks[8], (batch, in_dim), jnp.float32)
    eps_in = jax.random.normal(ks[9], (S, H), jnp.float32)
    eps_out = jax.random.normal(ks[10], (H, H), jnp.float32)
    noise_ctx = jax.random.normal(ks[11], (batch, 1, H), jnp.float32) * 1e-6
    noise_cho = jax.random.normal(ks[12], (batch, nb_choices, H),
                                  jnp.float32) * 1e-6

    prep = prepare_params(params, nb_context, H)

    scores, w_in, w_out = mcqa_bayes_classifier(
        prep, x, eps_in, eps_out, noise_ctx, noise_cho,
        nb_context, nb_choices, H)
    jax.block_until_ready(scores)

    scores_ref, w_in_ref, w_out_ref = reference(
        params, x, eps_in, eps_out, noise_ctx, noise_cho,
        nb_context, nb_choices, H)

    np.testing.assert_allclose(np.asarray(w_in), np.asarray(w_in_ref),
                               rtol=1e-4, atol=1e-4)
    np.testing.assert_allclose(np.asarray(w_out), np.asarray(w_out_ref),
                               rtol=1e-4, atol=1e-4)
    np.testing.assert_allclose(np.asarray(scores), np.asarray(scores_ref),
                               rtol=2e-3, atol=2e-3)
    print("KERNEL_OK")
</pallas_src>

<mosaic_0001>
module attributes {stable_mosaic.version = 11 : i64} {
  func.func @_fused_kernel(%arg0: memref<16x16xf32, #tpu.memory_space<vmem>>, %arg1: memref<16x32xf32, #tpu.memory_space<vmem>>, %arg2: memref<16x32xf32, #tpu.memory_space<vmem>>, %arg3: memref<16x32xf32, #tpu.memory_space<vmem>>, %arg4: memref<32x32xf32, #tpu.memory_space<vmem>>, %arg5: memref<32x32xf32, #tpu.memory_space<vmem>>, %arg6: memref<32x32xf32, #tpu.memory_space<vmem>>, %arg7: memref<3x32x32xf32, #tpu.memory_space<vmem>>, %arg8: memref<3x32xf32, #tpu.memory_space<vmem>>, %arg9: memref<4x32xf32, #tpu.memory_space<vmem>>, %arg10: memref<4x32xf32, #tpu.memory_space<vmem>>, %arg11: memref<4x32x32xf32, #tpu.memory_space<vmem>>, %arg12: memref<1x32xf32, #tpu.memory_space<vmem>>, %arg13: memref<2x32xf32, #tpu.memory_space<vmem>>, %arg14: memref<4x2x32xf32, #tpu.memory_space<vmem>>, %arg15: memref<2x128xf32, #tpu.memory_space<vmem>>, %arg16: memref<16x32xf32, #tpu.memory_space<vmem>>, %arg17: memref<32x32xf32, #tpu.memory_space<vmem>>, %arg18: memref<16x32xf32, #tpu.memory_space<vmem>>) attributes {dimension_semantics = [], scalar_prefetch = 0 : i64, scratch_operands = 1 : i64, tpu.core_type = #tpu.core_type<tc>} {
    %c0 = arith.constant 0 : index
    %c0_0 = arith.constant 0 : index
    %0 = vector.load %arg1[%c0, %c0_0] : memref<16x32xf32, #tpu.memory_space<vmem>>, vector<16x32xf32>
    %c0_1 = arith.constant 0 : index
    %c0_2 = arith.constant 0 : index
    %1 = vector.load %arg3[%c0_1, %c0_2] : memref<16x32xf32, #tpu.memory_space<vmem>>, vector<16x32xf32>
    %c0_3 = arith.constant 0 : index
    %c0_4 = arith.constant 0 : index
    %2 = vector.load %arg2[%c0_3, %c0_4] : memref<16x32xf32, #tpu.memory_space<vmem>>, vector<16x32xf32>
    %cst = arith.constant 5.000000e-01 : f32
    %3 = vector.broadcast %cst : f32 to vector<16x32xf32>
    %4 = arith.mulf %3, %2 : vector<16x32xf32>
    %5 = math.exp %4 : vector<16x32xf32>
    %6 = arith.mulf %1, %5 : vector<16x32xf32>
    %7 = arith.addf %0, %6 : vector<16x32xf32>
    %c0_5 = arith.constant 0 : index
    %c0_6 = arith.constant 0 : index
    %8 = vector.load %arg4[%c0_5, %c0_6] : memref<32x32xf32, #tpu.memory_space<vmem>>, vector<32x32xf32>
    %c0_7 = arith.constant 0 : index
    %c0_8 = arith.constant 0 : index
    %9 = vector.load %arg6[%c0_7, %c0_8] : memref<32x32xf32, #tpu.memory_space<vmem>>, vector<32x32xf32>
    %c0_9 = arith.constant 0 : index
    %c0_10 = arith.constant 0 : index
    %10 = vector.load %arg5[%c0_9, %c0_10] : memref<32x32xf32, #tpu.memory_space<vmem>>, vector<32x32xf32>
    %cst_11 = arith.constant 5.000000e-01 : f32
    %11 = vector.broadcast %cst_11 : f32 to vector<32x32xf32>
    %12 = arith.mulf %11, %10 : vector<32x32xf32>
    %13 = math.exp %12 : vector<32x32xf32>
    %14 = arith.mulf %9, %13 : vector<32x32xf32>
    %15 = arith.addf %8, %14 : vector<32x32xf32>
    %c0_12 = arith.constant 0 : index
    %c0_13 = arith.constant 0 : index
    %16 = vector.load %arg16[%c0_12, %c0_13] : memref<16x32xf32, #tpu.memory_space<vmem>>, vector<16x32xf32>
    tpu.vector_store %arg16[%c0_12, %c0_13], %7 {strides = array<i32>} : memref<16x32xf32, #tpu.memory_space<vmem>>, vector<16x32xf32>,
    %c0_14 = arith.constant 0 : index
    %c0_15 = arith.constant 0 : index
    %17 = vector.load %arg17[%c0_14, %c0_15] : memref<32x32xf32, #tpu.memory_space<vmem>>, vector<32x32xf32>
    tpu.vector_store %arg17[%c0_14, %c0_15], %15 {strides = array<i32>} : memref<32x32xf32, #tpu.memory_space<vmem>>, vector<32x32xf32>,
    %c0_16 = arith.constant 0 : index
    %c0_17 = arith.constant 0 : index
    %18 = vector.load %arg0[%c0_16, %c0_17] : memref<16x16xf32, #tpu.memory_space<vmem>>, vector<16x16xf32>
    %cst_18 = arith.constant dense<0.000000e+00> : vector<16x32xf32>
    %19 = tpu.matmul %18, %7, %cst_18 {dimension_numbers = #tpu.dot_dimension_numbers<[1], [0], [0], [1], [0, 0, 1, 1], [], []>} : vector<16x16xf32>, vector<16x32xf32>, vector<16x32xf32> -> vector<16x32xf32>
    %20 = arith.negf %19 : vector<16x32xf32>
    %21 = math.exp %20 : vector<16x32xf32>
    %cst_19 = arith.constant 1.000000e+00 : f32
    %22 = vector.broadcast %cst_19 : f32 to vector<16x32xf32>
    %23 = arith.addf %22, %21 : vector<16x32xf32>
    %24 = arith.divf %22, %23 : vector<16x32xf32>
    %25 = arith.mulf %19, %24 : vector<16x32xf32>
    %c0_20 = arith.constant 0 : index
    %c0_21 = arith.constant 0 : index
    %26 = vector.load %arg9[%c0_20, %c0_21] : memref<4x32xf32, #tpu.memory_space<vmem>>, vector<4x32xf32>
    %c0_22 = arith.constant 0 : index
    %c0_23 = arith.constant 0 : index
    %27 = vector.load %arg10[%c0_22, %c0_23] : memref<4x32xf32, #tpu.memory_space<vmem>>, vector<4x32xf32>
    %cst_24 = arith.constant dense<0.000000e+00> : vector<32xf32>
    %28 = vector.multi_reduction <add>, %25, %cst_24 [0] : vector<16x32xf32> to vector<32xf32>
    %29 = vector.shape_cast %28 : vector<32xf32> to vector<1x32xf32>
    %cst_25 = arith.constant 1.600000e+01 : f32
    %30 = vector.broadcast %cst_25 : f32 to vector<1x32xf32>
    %31 = arith.divf %29, %30 : vector<1x32xf32>
    %32 = arith.mulf %25, %25 : vector<16x32xf32>
    %cst_26 = arith.constant dense<0.000000e+00> : vector<32xf32>
    %33 = vector.multi_reduction <add>, %32, %cst_26 [0] : vector<16x32xf32> to vector<32xf32>
    %34 = vector.shape_cast %33 : vector<32xf32> to vector<1x32xf32>
    %cst_27 = arith.constant 1.600000e+01 : f32
    %35 = vector.broadcast %cst_27 : f32 to vector<1x32xf32>
    %36 = arith.divf %34, %35 : vector<1x32xf32>
    %37 = arith.mulf %31, %31 : vector<1x32xf32>
    %38 = arith.subf %36, %37 : vector<1x32xf32>
    %39 = vector.extract_strided_slice %26 {offsets = [0, 0], sizes = [1, 32], strides = [1, 1]} : vector<4x32xf32> to vector<1x32xf32>
    %cst_28 = arith.constant 9.99999974E-6 : f32
    %40 = vector.broadcast %cst_28 : f32 to vector<1x32xf32>
    %41 = arith.addf %38, %40 : vector<1x32xf32>
    %42 = math.rsqrt %41 : vector<1x32xf32>
    %43 = arith.mulf %39, %42 : vector<1x32xf32>
    %44 = vector.extract_strided_slice %27 {offsets = [0, 0], sizes = [1, 32], strides = [1, 1]} : vector<4x32xf32> to vector<1x32xf32>
    %45 = arith.mulf %31, %43 : vector<1x32xf32>
    %46 = arith.subf %44, %45 : vector<1x32xf32>
    %47 = vector.broadcast %43 : vector<1x32xf32> to vector<16x32xf32>
    %48 = arith.mulf %25, %47 : vector<16x32xf32>
    %49 = vector.broadcast %46 : vector<1x32xf32> to vector<16x32xf32>
    %50 = arith.addf %48, %49 : vector<16x32xf32>
    %c0_29 = arith.constant 0 : index
    %c0_30 = arith.constant 0 : index
    %c0_31 = arith.constant 0 : index
    %51 = vector.load %arg7[%c0_29, %c0_30, %c0_31] : memref<3x32x32xf32, #tpu.memory_space<vmem>>, vector<1x32x32xf32>
    %52 = vector.shape_cast %51 : vector<1x32x32xf32> to vector<32x32xf32>
    %cst_32 = arith.constant dense<0.000000e+00> : vector<16x32xf32>
    %53 = tpu.matmul %50, %52, %cst_32 {dimension_numbers = #tpu.dot_dimension_numbers<[1], [0], [0], [1], [0, 0, 1, 1], [], []>} : vector<16x32xf32>, vector<32x32xf32>, vector<16x32xf32> -> vector<16x32xf32>
    %c0_33 = arith.constant 0 : index
    %c0_34 = arith.constant 0 : index
    %54 = vector.load %arg8[%c0_33, %c0_34] : memref<3x32xf32, #tpu.memory_space<vmem>>, vector<1x32xf32>
    %55 = vector.broadcast %54 : vector<1x32xf32> to vector<16x32xf32>
    %56 = arith.addf %53, %55 : vector<16x32xf32>
    %57 = arith.negf %56 : vector<16x32xf32>
    %58 = math.exp %57 : vector<16x32xf32>
    %cst_35 = arith.constant 1.000000e+00 : f32
    %59 = vector.broadcast %cst_35 : f32 to vector<16x32xf32>
    %60 = arith.addf %59, %58 : vector<16x32xf32>
    %61 = arith.divf %59, %60 : vector<16x32xf32>
    %62 = arith.mulf %56, %61 : vector<16x32xf32>
    %63 = arith.addf %62, %50 : vector<16x32xf32>
    %cst_36 = arith.constant dense<0.000000e+00> : vector<32xf32>
    %64 = vector.multi_reduction <add>, %63, %cst_36 [0] : vector<16x32xf32> to vector<32xf32>
    %65 = vector.shape_cast %64 : vector<32xf32> to vector<1x32xf32>
    %cst_37 = arith.constant 1.600000e+01 : f32
    %66 = vector.broadcast %cst_37 : f32 to vector<1x32xf32>
    %67 = arith.divf %65, %66 : vector<1x32xf32>
    %68 = arith.mulf %63, %63 : vector<16x32xf32>
    %cst_38 = arith.constant dense<0.000000e+00> : vector<32xf32>
    %69 = vector.multi_reduction <add>, %68, %cst_38 [0] : vector<16x32xf32> to vector<32xf32>
    %70 = vector.shape_cast %69 : vector<32xf32> to vector<1x32xf32>
    %cst_39 = arith.constant 1.600000e+01 : f32
    %71 = vector.broadcast %cst_39 : f32 to vector<1x32xf32>
    %72 = arith.divf %70, %71 : vector<1x32xf32>
    %73 = arith.mulf %67, %67 : vector<1x32xf32>
    %74 = arith.subf %72, %73 : vector<1x32xf32>
    %75 = vector.extract_strided_slice %26 {offsets = [1, 0], sizes = [1, 32], strides = [1, 1]} : vector<4x32xf32> to vector<1x32xf32>
    %cst_40 = arith.constant 9.99999974E-6 : f32
    %76 = vector.broadcast %cst_40 : f32 to vector<1x32xf32>
    %77 = arith.addf %74, %76 : vector<1x32xf32>
    %78 = math.rsqrt %77 : vector<1x32xf32>
    %79 = arith.mulf %75, %78 : vector<1x32xf32>
    %80 = vector.extract_strided_slice %27 {offsets = [1, 0], sizes = [1, 32], strides = [1, 1]} : vector<4x32xf32> to vector<1x32xf32>
    %81 = arith.mulf %67, %79 : vector<1x32xf32>
    %82 = arith.subf %80, %81 : vector<1x32xf32>
    %83 = vector.broadcast %79 : vector<1x32xf32> to vector<16x32xf32>
    %84 = arith.mulf %63, %83 : vector<16x32xf32>
    %85 = vector.broadcast %82 : vector<1x32xf32> to vector<16x32xf32>
    %86 = arith.addf %84, %85 : vector<16x32xf32>
    %c1 = arith.constant 1 : index
    %c0_41 = arith.constant 0 : index
    %c0_42 = arith.constant 0 : index
    %87 = vector.load %arg7[%c1, %c0_41, %c0_42] : memref<3x32x32xf32, #tpu.memory_space<vmem>>, vector<1x32x32xf32>
    %88 = vector.shape_cast %87 : vector<1x32x32xf32> to vector<32x32xf32>
    %cst_43 = arith.constant dense<0.000000e+00> : vector<16x32xf32>
    %89 = tpu.matmul %86, %88, %cst_43 {dimension_numbers = #tpu.dot_dimension_numbers<[1], [0], [0], [1], [0, 0, 1, 1], [], []>} : vector<16x32xf32>, vector<32x32xf32>, vector<16x32xf32> -> vector<16x32xf32>
    %c1_44 = arith.constant 1 : index
    %c0_45 = arith.constant 0 : index
    %90 = vector.load %arg8[%c1_44, %c0_45] : memref<3x32xf32, #tpu.memory_space<vmem>>, vector<1x32xf32>
    %91 = vector.broadcast %90 : vector<1x32xf32> to vector<16x32xf32>
    %92 = arith.addf %89, %91 : vector<16x32xf32>
    %93 = arith.negf %92 : vector<16x32xf32>
    %94 = math.exp %93 : vector<16x32xf32>
    %cst_46 = arith.constant 1.000000e+00 : f32
    %95 = vector.broadcast %cst_46 : f32 to vector<16x32xf32>
    %96 = arith.addf %95, %94 : vector<16x32xf32>
    %97 = arith.divf %95, %96 : vector<16x32xf32>
    %98 = arith.mulf %92, %97 : vector<16x32xf32>
    %99 = arith.addf %98, %86 : vector<16x32xf32>
    %cst_47 = arith.constant dense<0.000000e+00> : vector<32xf32>
    %100 = vector.multi_reduction <add>, %99, %cst_47 [0] : vector<16x32xf32> to vector<32xf32>
    %101 = vector.shape_cast %100 : vector<32xf32> to vector<1x32xf32>
    %cst_48 = arith.constant 1.600000e+01 : f32
    %102 = vector.broadcast %cst_48 : f32 to vector<1x32xf32>
    %103 = arith.divf %101, %102 : vector<1x32xf32>
    %104 = arith.mulf %99, %99 : vector<16x32xf32>
    %cst_49 = arith.constant dense<0.000000e+00> : vector<32xf32>
    %105 = vector.multi_reduction <add>, %104, %cst_49 [0] : vector<16x32xf32> to vector<32xf32>
    %106 = vector.shape_cast %105 : vector<32xf32> to vector<1x32xf32>
    %cst_50 = arith.constant 1.600000e+01 : f32
    %107 = vector.broadcast %cst_50 : f32 to vector<1x32xf32>
    %108 = arith.divf %106, %107 : vector<1x32xf32>
    %109 = arith.mulf %103, %103 : vector<1x32xf32>
    %110 = arith.subf %108, %109 : vector<1x32xf32>
    %111 = vector.extract_strided_slice %26 {offsets = [2, 0], sizes = [1, 32], strides = [1, 1]} : vector<4x32xf32> to vector<1x32xf32>
    %cst_51 = arith.constant 9.99999974E-6 : f32
    %112 = vector.broadcast %cst_51 : f32 to vector<1x32xf32>
    %113 = arith.addf %110, %112 : vector<1x32xf32>
    %114 = math.rsqrt %113 : vector<1x32xf32>
    %115 = arith.mulf %111, %114 : vector<1x32xf32>
    %116 = vector.extract_strided_slice %27 {offsets = [2, 0], sizes = [1, 32], strides = [1, 1]} : vector<4x32xf32> to vector<1x32xf32>
    %117 = arith.mulf %103, %115 : vector<1x32xf32>
    %118 = arith.subf %116, %117 : vector<1x32xf32>
    %119 = vector.broadcast %115 : vector<1x32xf32> to vector<16x32xf32>
    %120 = arith.mulf %99, %119 : vector<16x32xf32>
    %121 = vector.broadcast %118 : vector<1x32xf32> to vector<16x32xf32>
    %122 = arith.addf %120, %121 : vector<16x32xf32>
    %c2 = arith.constant 2 : index
    %c0_52 = arith.constant 0 : index
    %c0_53 = arith.constant 0 : index
    %123 = vector.load %arg7[%c2, %c0_52, %c0_53] : memref<3x32x32xf32, #tpu.memory_space<vmem>>, vector<1x32x32xf32>
    %124 = vector.shape_cast %123 : vector<1x32x32xf32> to vector<32x32xf32>
    %cst_54 = arith.constant dense<0.000000e+00> : vector<16x32xf32>
    %125 = tpu.matmul %122, %124, %cst_54 {dimension_numbers = #tpu.dot_dimension_numbers<[1], [0], [0], [1], [0, 0, 1, 1], [], []>} : vector<16x32xf32>, vector<32x32xf32>, vector<16x32xf32> -> vector<16x32xf32>
    %c2_55 = arith.constant 2 : index
    %c0_56 = arith.constant 0 : index
    %126 = vector.load %arg8[%c2_55, %c0_56] : memref<3x32xf32, #tpu.memory_space<vmem>>, vector<1x32xf32>
    %127 = vector.broadcast %126 : vector<1x32xf32> to vector<16x32xf32>
    %128 = arith.addf %125, %127 : vector<16x32xf32>
    %129 = arith.negf %128 : vector<16x32xf32>
    %130 = math.exp %129 : vector<16x32xf32>
    %cst_57 = arith.constant 1.000000e+00 : f32
    %131 = vector.broadcast %cst_57 : f32 to vector<16x32xf32>
    %132 = arith.addf %131, %130 : vector<16x32xf32>
    %133 = arith.divf %131, %132 : vector<16x32xf32>
    %134 = arith.mulf %128, %133 : vector<16x32xf32>
    %135 = arith.addf %134, %122 : vector<16x32xf32>
    %cst_58 = arith.constant dense<0.000000e+00> : vector<32xf32>
    %136 = vector.multi_reduction <add>, %135, %cst_58 [0] : vector<16x32xf32> to vector<32xf32>
    %137 = vector.shape_cast %136 : vector<32xf32> to vector<1x32xf32>
    %cst_59 = arith.constant 1.600000e+01 : f32
    %138 = vector.broadcast %cst_59 : f32 to vector<1x32xf32>
    %139 = arith.divf %137, %138 : vector<1x32xf32>
    %140 = arith.mulf %135, %135 : vector<16x32xf32>
    %cst_60 = arith.constant dense<0.000000e+00> : vector<32xf32>
    %141 = vector.multi_reduction <add>, %140, %cst_60 [0] : vector<16x32xf32> to vector<32xf32>
    %142 = vector.shape_cast %141 : vector<32xf32> to vector<1x32xf32>
    %cst_61 = arith.constant 1.600000e+01 : f32
    %143 = vector.broadcast %cst_61 : f32 to vector<1x32xf32>
    %144 = arith.divf %142, %143 : vector<1x32xf32>
    %145 = arith.mulf %139, %139 : vector<1x32xf32>
    %146 = arith.subf %144, %145 : vector<1x32xf32>
    %147 = vector.extract_strided_slice %26 {offsets = [3, 0], sizes = [1, 32], strides = [1, 1]} : vector<4x32xf32> to vector<1x32xf32>
    %cst_62 = arith.constant 9.99999974E-6 : f32
    %148 = vector.broadcast %cst_62 : f32 to vector<1x32xf32>
    %149 = arith.addf %146, %148 : vector<1x32xf32>
    %150 = math.rsqrt %149 : vector<1x32xf32>
    %151 = arith.mulf %147, %150 : vector<1x32xf32>
    %152 = vector.extract_strided_slice %27 {offsets = [3, 0], sizes = [1, 32], strides = [1, 1]} : vector<4x32xf32> to vector<1x32xf32>
    %153 = arith.mulf %139, %151 : vector<1x32xf32>
    %154 = arith.subf %152, %153 : vector<1x32xf32>
    %155 = vector.broadcast %151 : vector<1x32xf32> to vector<16x32xf32>
    %156 = arith.mulf %135, %155 : vector<16x32xf32>
    %157 = vector.broadcast %154 : vector<1x32xf32> to vector<16x32xf32>
    %158 = arith.addf %156, %157 : vector<16x32xf32>
    %cst_63 = arith.constant dense<0.000000e+00> : vector<16x32xf32>
    %159 = tpu.matmul %158, %15, %cst_63 {dimension_numbers = #tpu.dot_dimension_numbers<[1], [0], [0], [1], [0, 0, 1, 1], [], []>} : vector<16x32xf32>, vector<32x32xf32>, vector<16x32xf32> -> vector<16x32xf32>
    %c0_64 = arith.constant 0 : index
    %c0_65 = arith.constant 0 : index
    %160 = vector.load %arg18[%c0_64, %c0_65] : memref<16x32xf32, #tpu.memory_space<vmem>>, vector<16x32xf32>
    tpu.vector_store %arg18[%c0_64, %c0_65], %159 {strides = array<i32>} : memref<16x32xf32, #tpu.memory_space<vmem>>, vector<16x32xf32>,
    %c0_66 = arith.constant 0 : index
    %c0_67 = arith.constant 0 : index
    %161 = vector.load %arg18[%c0_66, %c0_67] : memref<16x32xf32, #tpu.memory_space<vmem>>, vector<2x32xf32>
    %c0_68 = arith.constant 0 : index
    %c0_69 = arith.constant 0 : index
    %c0_70 = arith.constant 0 : index
    %162 = vector.load %arg11[%c0_68, %c0_69, %c0_70] : memref<4x32x32xf32, #tpu.memory_space<vmem>>, vector<1x32x32xf32>
    %163 = vector.shape_cast %162 : vector<1x32x32xf32> to vector<32x32xf32>
    %cst_71 = arith.constant dense<0.000000e+00> : vector<2x32xf32>
    %164 = tpu.matmul %161, %163, %cst_71 {dimension_numbers = #tpu.dot_dimension_numbers<[1], [0], [0], [1], [0, 0, 1, 1], [], []>} : vector<2x32xf32>, vector<32x32xf32>, vector<2x32xf32> -> vector<2x32xf32>
    %c2_72 = arith.constant 2 : index
    %c0_73 = arith.constant 0 : index
    %165 = vector.load %arg18[%c2_72, %c0_73] : memref<16x32xf32, #tpu.memory_space<vmem>>, vector<2x32xf32>
    %c1_74 = arith.constant 1 : index
    %c0_75 = arith.constant 0 : index
    %c0_76 = arith.constant 0 : index
    %166 = vector.load %arg11[%c1_74, %c0_75, %c0_76] : memref<4x32x32xf32, #tpu.memory_space<vmem>>, vector<1x32x32xf32>
    %167 = vector.shape_cast %166 : vector<1x32x32xf32> to vector<32x32xf32>
    %cst_77 = arith.constant dense<0.000000e+00> : vector<2x32xf32>
    %168 = tpu.matmul %165, %167, %cst_77 {dimension_numbers = #tpu.dot_dimension_numbers<[1], [0], [0], [1], [0, 0, 1, 1], [], []>} : vector<2x32xf32>, vector<32x32xf32>, vector<2x32xf32> -> vector<2x32xf32>
    %169 = arith.addf %164, %168 : vector<2x32xf32>
    %c4 = arith.constant 4 : index
    %c0_78 = arith.constant 0 : index
    %170 = vector.load %arg18[%c4, %c0_78] : memref<16x32xf32, #tpu.memory_space<vmem>>, vector<2x32xf32>
    %c2_79 = arith.constant 2 : index
    %c0_80 = arith.constant 0 : index
    %c0_81 = arith.constant 0 : index
    %171 = vector.load %arg11[%c2_79, %c0_80, %c0_81] : memref<4x32x32xf32, #tpu.memory_space<vmem>>, vector<1x32x32xf32>
    %172 = vector.shape_cast %171 : vector<1x32x32xf32> to vector<32x32xf32>
    %cst_82 = arith.constant dense<0.000000e+00> : vector<2x32xf32>
    %173 = tpu.matmul %170, %172, %cst_82 {dimension_numbers = #tpu.dot_dimension_numbers<[1], [0], [0], [1], [0, 0, 1, 1], [], []>} : vector<2x32xf32>, vector<32x32xf32>, vector<2x32xf32> -> vector<2x32xf32>
    %174 = arith.addf %169, %173 : vector<2x32xf32>
    %c6 = arith.constant 6 : index
    %c0_83 = arith.constant 0 : index
    %175 = vector.load %arg18[%c6, %c0_83] : memref<16x32xf32, #tpu.memory_space<vmem>>, vector<2x32xf32>
    %c3 = arith.constant 3 : index
    %c0_84 = arith.constant 0 : index
    %c0_85 = arith.constant 0 : index
    %176 = vector.load %arg11[%c3, %c0_84, %c0_85] : memref<4x32x32xf32, #tpu.memory_space<vmem>>, vector<1x32x32xf32>
    %177 = vector.shape_cast %176 : vector<1x32x32xf32> to vector<32x32xf32>
    %cst_86 = arith.constant dense<0.000000e+00> : vector<2x32xf32>
    %178 = tpu.matmul %175, %177, %cst_86 {dimension_numbers = #tpu.dot_dimension_numbers<[1], [0], [0], [1], [0, 0, 1, 1], [], []>} : vector<2x32xf32>, vector<32x32xf32>, vector<2x32xf32> -> vector<2x32xf32>
    %179 = arith.addf %174, %178 : vector<2x32xf32>
    %c0_87 = arith.constant 0 : index
    %c0_88 = arith.constant 0 : index
    %180 = vector.load %arg12[%c0_87, %c0_88] : memref<1x32xf32, #tpu.memory_space<vmem>>, vector<1x32xf32>
    %181 = vector.broadcast %180 : vector<1x32xf32> to vector<2x32xf32>
    %182 = arith.addf %179, %181 : vector<2x32xf32>
    %183 = arith.negf %182 : vector<2x32xf32>
    %184 = math.exp %183 : vector<2x32xf32>
    %cst_89 = arith.constant 1.000000e+00 : f32
    %185 = vector.broadcast %cst_89 : f32 to vector<2x32xf32>
    %186 = arith.addf %185, %184 : vector<2x32xf32>
    %187 = arith.divf %185, %186 : vector<2x32xf32>
    %188 = arith.mulf %182, %187 : vector<2x32xf32>
    %c0_90 = arith.constant 0 : index
    %c0_91 = arith.constant 0 : index
    %189 = vector.load %arg13[%c0_90, %c0_91] : memref<2x32xf32, #tpu.memory_space<vmem>>, vector<2x32xf32>
    %190 = arith.addf %188, %189 : vector<2x32xf32>
    %191 = arith.mulf %190, %190 : vector<2x32xf32>
    %cst_92 = arith.constant dense<0.000000e+00> : vector<2xf32>
    %192 = vector.multi_reduction <add>, %191, %cst_92 [1] : vector<2x32xf32> to vector<2xf32>
    %193 = vector.shape_cast %192 : vector<2xf32> to vector<2x1xf32>
    %194 = math.rsqrt %193 : vector<2x1xf32>
    %195 = vector.broadcast %194 : vector<2x1xf32> to vector<2x32xf32>
    %196 = arith.mulf %190, %195 : vector<2x32xf32>
    %197 = tpu.iota {dimensions = array<i32: 1>} : vector<2x128xi32>
    %cst_93 = arith.constant 0.000000e+00 : f32
    %198 = vector.broadcast %cst_93 : f32 to vector<2x128xf32>
    %c8 = arith.constant 8 : index
    %c0_94 = arith.constant 0 : index
    %199 = vector.load %arg18[%c8, %c0_94] : memref<16x32xf32, #tpu.memory_space<vmem>>, vector<2x32xf32>
    %c0_95 = arith.constant 0 : index
    %c0_96 = arith.constant 0 : index
    %c0_97 = arith.constant 0 : index
    %200 = vector.load %arg14[%c0_95, %c0_96, %c0_97] : memref<4x2x32xf32, #tpu.memory_space<vmem>>, vector<1x2x32xf32>
    %201 = vector.shape_cast %200 : vector<1x2x32xf32> to vector<2x32xf32>
    %202 = arith.addf %199, %201 : vector<2x32xf32>
    %203 = arith.mulf %202, %202 : vector<2x32xf32>
    %cst_98 = arith.constant dense<0.000000e+00> : vector<2xf32>
    %204 = vector.multi_reduction <add>, %203, %cst_98 [1] : vector<2x32xf32> to vector<2xf32>
    %205 = vector.shape_cast %204 : vector<2xf32> to vector<2x1xf32>
    %206 = math.rsqrt %205 : vector<2x1xf32>
    %207 = vector.broadcast %206 : vector<2x1xf32> to vector<2x32xf32>
    %208 = arith.mulf %202, %207 : vector<2x32xf32>
    %209 = arith.mulf %196, %208 : vector<2x32xf32>
    %cst_99 = arith.constant dense<0.000000e+00> : vector<2xf32>
    %210 = vector.multi_reduction <add>, %209, %cst_99 [1] : vector<2x32xf32> to vector<2xf32>
    %211 = vector.shape_cast %210 : vector<2xf32> to vector<2x1xf32>
    %c0_i32 = arith.constant 0 : i32
    %212 = vector.broadcast %c0_i32 : i32 to vector<2x128xi32>
    %213 = arith.cmpi eq, %197, %212 : vector<2x128xi32>
    %214 = vector.shape_cast %211 : vector<2x1xf32> to vector<2x1xf32>
    %215 = vector.broadcast %214 : vector<2x1xf32> to vector<2x128xf32>
    %216 = arith.select %213, %215, %198 : vector<2x128xi1>, vector<2x128xf32>
    %c10 = arith.constant 10 : index
    %c0_100 = arith.constant 0 : index
    %217 = vector.load %arg18[%c10, %c0_100] : memref<16x32xf32, #tpu.memory_space<vmem>>, vector<2x32xf32>
    %c1_101 = arith.constant 1 : index
    %c0_102 = arith.constant 0 : index
    %c0_103 = arith.constant 0 : index
    %218 = vector.load %arg14[%c1_101, %c0_102, %c0_103] : memref<4x2x32xf32, #tpu.memory_space<vmem>>, vector<1x2x32xf32>
    %219 = vector.shape_cast %218 : vector<1x2x32xf32> to vector<2x32xf32>
    %220 = arith.addf %217, %219 : vector<2x32xf32>
    %221 = arith.mulf %220, %220 : vector<2x32xf32>
    %cst_104 = arith.constant dense<0.000000e+00> : vector<2xf32>
    %222 = vector.multi_reduction <add>, %221, %cst_104 [1] : vector<2x32xf32> to vector<2xf32>
    %223 = vector.shape_cast %222 : vector<2xf32> to vector<2x1xf32>
    %224 = math.rsqrt %223 : vector<2x1xf32>
    %225 = vector.broadcast %224 : vector<2x1xf32> to vector<2x32xf32>
    %226 = arith.mulf %220, %225 : vector<2x32xf32>
    %227 = arith.mulf %196, %226 : vector<2x32xf32>
    %cst_105 = arith.constant dense<0.000000e+00> : vector<2xf32>
    %228 = vector.multi_reduction <add>, %227, %cst_105 [1] : vector<2x32xf32> to vector<2xf32>
    %229 = vector.shape_cast %228 : vector<2xf32> to vector<2x1xf32>
    %c1_i32 = arith.constant 1 : i32
    %230 = vector.broadcast %c1_i32 : i32 to vector<2x128xi32>
    %231 = arith.cmpi eq, %197, %230 : vector<2x128xi32>
    %232 = vector.shape_cast %229 : vector<2x1xf32> to vector<2x1xf32>
    %233 = vector.broadcast %232 : vector<2x1xf32> to vector<2x128xf32>
    %234 = arith.select %231, %233, %216 : vector<2x128xi1>, vector<2x128xf32>
    %c12 = arith.constant 12 : index
    %c0_106 = arith.constant 0 : index
    %235 = vector.load %arg18[%c12, %c0_106] : memref<16x32xf32, #tpu.memory_space<vmem>>, vector<2x32xf32>
    %c2_107 = arith.constant 2 : index
    %c0_108 = arith.constant 0 : index
    %c0_109 = arith.constant 0 : index
    %236 = vector.load %arg14[%c2_107, %c0_108, %c0_109] : memref<4x2x32xf32, #tpu.memory_space<vmem>>, vector<1x2x32xf32>
    %237 = vector.shape_cast %236 : vector<1x2x32xf32> to vector<2x32xf32>
    %238 = arith.addf %235, %237 : vector<2x32xf32>
    %239 = arith.mulf %238, %238 : vector<2x32xf32>
    %cst_110 = arith.constant dense<0.000000e+00> : vector<2xf32>
    %240 = vector.multi_reduction <add>, %239, %cst_110 [1] : vector<2x32xf32> to vector<2xf32>
    %241 = vector.shape_cast %240 : vector<2xf32> to vector<2x1xf32>
    %242 = math.rsqrt %241 : vector<2x1xf32>
    %243 = vector.broadcast %242 : vector<2x1xf32> to vector<2x32xf32>
    %244 = arith.mulf %238, %243 : vector<2x32xf32>
    %245 = arith.mulf %196, %244 : vector<2x32xf32>
    %cst_111 = arith.constant dense<0.000000e+00> : vector<2xf32>
    %246 = vector.multi_reduction <add>, %245, %cst_111 [1] : vector<2x32xf32> to vector<2xf32>
    %247 = vector.shape_cast %246 : vector<2xf32> to vector<2x1xf32>
    %c2_i32 = arith.constant 2 : i32
    %248 = vector.broadcast %c2_i32 : i32 to vector<2x128xi32>
    %249 = arith.cmpi eq, %197, %248 : vector<2x128xi32>
    %250 = vector.shape_cast %247 : vector<2x1xf32> to vector<2x1xf32>
    %251 = vector.broadcast %250 : vector<2x1xf32> to vector<2x128xf32>
    %252 = arith.select %249, %251, %234 : vector<2x128xi1>, vector<2x128xf32>
    %c14 = arith.constant 14 : index
    %c0_112 = arith.constant 0 : index
    %253 = vector.load %arg18[%c14, %c0_112] : memref<16x32xf32, #tpu.memory_space<vmem>>, vector<2x32xf32>
    %c3_113 = arith.constant 3 : index
    %c0_114 = arith.constant 0 : index
    %c0_115 = arith.constant 0 : index
    %254 = vector.load %arg14[%c3_113, %c0_114, %c0_115] : memref<4x2x32xf32, #tpu.memory_space<vmem>>, vector<1x2x32xf32>
    %255 = vector.shape_cast %254 : vector<1x2x32xf32> to vector<2x32xf32>
    %256 = arith.addf %253, %255 : vector<2x32xf32>
    %257 = arith.mulf %256, %256 : vector<2x32xf32>
    %cst_116 = arith.constant dense<0.000000e+00> : vector<2xf32>
    %258 = vector.multi_reduction <add>, %257, %cst_116 [1] : vector<2x32xf32> to vector<2xf32>
    %259 = vector.shape_cast %258 : vector<2xf32> to vector<2x1xf32>
    %260 = math.rsqrt %259 : vector<2x1xf32>
    %261 = vector.broadcast %260 : vector<2x1xf32> to vector<2x32xf32>
    %262 = arith.mulf %256, %261 : vector<2x32xf32>
    %263 = arith.mulf %196, %262 : vector<2x32xf32>
    %cst_117 = arith.constant dense<0.000000e+00> : vector<2xf32>
    %264 = vector.multi_reduction <add>, %263, %cst_117 [1] : vector<2x32xf32> to vector<2xf32>
    %265 = vector.shape_cast %264 : vector<2xf32> to vector<2x1xf32>
    %c3_i32 = arith.constant 3 : i32
    %266 = vector.broadcast %c3_i32 : i32 to vector<2x128xi32>
    %267 = arith.cmpi eq, %197, %266 : vector<2x128xi32>
    %268 = vector.shape_cast %265 : vector<2x1xf32> to vector<2x1xf32>
    %269 = vector.broadcast %268 : vector<2x1xf32> to vector<2x128xf32>
    %270 = arith.select %267, %269, %252 : vector<2x128xi1>, vector<2x128xf32>
    %c0_118 = arith.constant 0 : index
    %c0_119 = arith.constant 0 : index
    %271 = vector.load %arg15[%c0_118, %c0_119] : memref<2x128xf32, #tpu.memory_space<vmem>>, vector<2x128xf32>
    tpu.vector_store %arg15[%c0_118, %c0_119], %270 {strides = array<i32>} : memref<2x128xf32, #tpu.memory_space<vmem>>, vector<2x128xf32>,
    return
  }
}

</mosaic_0001>

<bundles_post_ra>
// kernel: tpu_custom_call.1
= control target key start
LH: loop header
LB: loop body
LE: loop exit
PB: predicated region body
PF: predicated region fallthrough
CT: control target
= control target key end

     0   :  { %s2390_s0 = inlined_call_operand.hbm [shape: f32[16,16], index: 0, kind: input, shape index: {}]   ;;  %s2391_s1 = inlined_call_operand.hbm [shape: f32[16,32], index: 1, kind: input, shape index: {}]   ;;  %s2392_s2 = inlined_call_operand.hbm [shape: f32[16,32], index: 2, kind: input, shape index: {}]   ;;  %s2393_s3 = inlined_call_operand.hbm [shape: f32[16,32], index: 3, kind: input, shape index: {}]   ;;  %s2394_s4 = inlined_call_operand.hbm [shape: f32[32,32], index: 4, kind: input, shape index: {}]   ;;  %s2395_s5 = inlined_call_operand.hbm [shape: f32[32,32], index: 5, kind: input, shape index: {}]   ;;  %s2396_s6 = inlined_call_operand.hbm [shape: f32[32,32], index: 6, kind: input, shape index: {}]   ;;  %s2397_s7 = inlined_call_operand.hbm [shape: f32[3,32,32], index: 7, kind: input, shape index: {}]   ;;  %s2398_s8 = inlined_call_operand.vmem [shape: f32[3,32], index: 8, kind: input, shape index: {}]   ;;  %s2399_s9 = inlined_call_operand.vmem [shape: f32[4,32], index: 9, kind: input, shape index: {}]   ;;  %s2400_s10 = inlined_call_operand.vmem [shape: f32[4,32], index: 10, kind: input, shape index: {}]   ;;  %s2401_s11 = inlined_call_operand.hbm [shape: f32[4,32,32], index: 11, kind: input, shape index: {}]   ;;  %s2402_s12 = inlined_call_operand.vmem [shape: f32[1,32], index: 12, kind: input, shape index: {}]   ;;  %s2403_s13 = inlined_call_operand.vmem [shape: f32[2,32], index: 13, kind: input, shape index: {}]   ;;  %s2404_s14 = inlined_call_operand.vmem [shape: f32[4,2,32], index: 14, kind: input, shape index: {}]   ;;  %s2405_s15 = inlined_call_operand.hbm [shape: f32[2,128], index: 15, kind: output, shape index: {0}]   ;;  %s2406_s16 = inlined_call_operand.hbm [shape: f32[16,32], index: 16, kind: output, shape index: {1}]   ;;  %s2407_s17 = inlined_call_operand.hbm [shape: f32[32,32], index: 17, kind: output, shape index: {2}]  }
   0x1   :  { %2411 = sst [smem:[#allocation29_spill]] %s2390_s0 }
   0x2   :  { %2412 = sst [smem:[#allocation30_spill]] %s2391_s1 }
   0x3   :  { %2413 = sst [smem:[#allocation31_spill]] %s2405_s15 }
   0x4   :  { %23 = vsyncpa [#allocation4], 0 }
   0x5   :  { %24 = vsyncpa [#allocation7], 0 }
   0x6   :  { %25 = vsyncpa [#allocation10], 0 }
   0x7   :  { %26 = vsyncpa [#allocation13], 0 }
   0x8   :  { %27 = vsyncpa [#allocation16], 0 }
   0x9   :  { %28 = vsyncpa [#allocation5], 0 }
   0xa   :  { %29 = vsyncpa [#allocation20], 0  ;;  %s1951_s24 = smov [#allocation6]   ;;  %s1952_s26 = smov [#allocation9]  }
   0xb   :  { %s47_s25 = sshll.u32 %s1951_s24, 4  ;;  %s71_s27 = sshll.u32 %s1952_s26, 4  ;;  %s48_s25 = int_to_ptr.vmem [resolvable:$true] %s47_s25  ;;  %s2058_s27 = int_to_ptr.vmem [resolvable:$true] %s71_s27 }
   0xc   :  { %s2414_s0 = sld [smem:[#allocation30_spill]] }
  0x12   :  { %s1673_s30 = scalar_lea.hbm %s2414_s0, 256 }
  0x13   :  { %p1674_p0 = scmp.ne.s32.totalorder %s2414_s0, %s1673_s30  ;;  %p1677_p1 = scmp.lt.u32.totalorder %s1673_s30, %s2414_s0 }
  0x15   :  { %p1679_p2 = pnand %p1677_p1, %p1674_p0 }
  0x17   :  { %1682 = shalt.err (!%p1679_p2)
}
  0x18   :  { %s1683_s21 = scalar_lea.vmem %s48_s25, 256  ;;  %p1688_p4 = scmp.lt.s32.totalorder %s48_s25, %s48_s25 }
  0x19   :  { %p1684_p3 = scmp.ne.s32.totalorder %s48_s25, %s1683_s21  ;;  %p1689_p5 = scmp.lt.s32.totalorder %s1683_s21, %s1683_s21 }
  0x1b   :  { %p1690_p6 = por %p1689_p5, %p1688_p4 }
  0x1d   :  { %p1691_p7 = pnand %p1690_p6, %p1684_p3 }
  0x1f   :  { %1694 = shalt.err (!%p1691_p7)
}
  0x20   :  { %s1953_s22 = smov 128   ;;  %s1954_s23 = smov 8  }
  0x21   :  { %53 = dma.hbm_to_vmem [thread:$0]  %s2414_s0, 256, %s48_s25, [#allocation7], %s1953_s22, %s1953_s22, %s1954_s23  }
  0x22   :  { %s1695_s30 = scalar_lea.hbm %s2393_s3, 256 }
  0x23   :  { %p1696_p8 = scmp.ne.s32.totalorder %s2393_s3, %s1695_s30  ;;  %p1699_p9 = scmp.lt.u32.totalorder %s1695_s30, %s2393_s3 }
  0x25   :  { %p1701_p10 = pnand %p1699_p9, %p1696_p8 }
  0x27   :  { %1704 = shalt.err (!%p1701_p10)
}
  0x28   :  { %s1705_s21 = scalar_lea.vmem %s2058_s27, 256  ;;  %p1710_p12 = scmp.lt.s32.totalorder %s2058_s27, %s2058_s27 }
  0x29   :  { %p1706_p11 = scmp.ne.s32.totalorder %s2058_s27, %s1705_s21  ;;  %p1711_p13 = scmp.lt.s32.totalorder %s1705_s21, %s1705_s21 }
  0x2b   :  { %p1712_p0 = por %p1711_p13, %p1710_p12 }
  0x2d   :  { %p1713_p1 = pnand %p1712_p0, %p1706_p11 }
  0x2f   :  { %1716 = shalt.err (!%p1713_p1)
}
  0x30   :  { %77 = dma.hbm_to_vmem [thread:$0]  %s2393_s3, 256, %s2058_s27, [#allocation10], %s1953_s22, %s1953_s22, %s1954_s23  }
  0x31   :  { %s1955_s24 = smov [#allocation12]   ;;  %s1956_s28 = smov [#allocation15]  }
  0x32   :  { %s95_s26 = sshll.u32 %s1955_s24, 4  ;;  %s119_s29 = sshll.u32 %s1956_s28, 4  ;;  %s96_s26 = int_to_ptr.vmem [resolvable:$true] %s95_s26  ;;  %s2095_s29 = int_to_ptr.vmem [resolvable:$true] %s119_s29 }
  0x33   :  { %s1717_s19 = scalar_lea.hbm %s2395_s5, 512 }
  0x34   :  { %p1718_p2 = scmp.ne.s32.totalorder %s2395_s5, %s1717_s19  ;;  %p1721_p3 = scmp.lt.u32.totalorder %s1717_s19, %s2395_s5 }
  0x36   :  { %p1723_p4 = pnand %p1721_p3, %p1718_p2 }
  0x38   :  { %1726 = shalt.err (!%p1723_p4)
}
  0x39   :  { %s1727_s3 = scalar_lea.vmem %s96_s26, 512  ;;  %p1732_p6 = scmp.lt.s32.totalorder %s96_s26, %s96_s26 }
  0x3a   :  { %p1728_p5 = scmp.ne.s32.totalorder %s96_s26, %s1727_s3  ;;  %p1733_p7 = scmp.lt.s32.totalorder %s1727_s3, %s1727_s3 }
  0x3c   :  { %p1734_p8 = por %p1733_p7, %p1732_p6 }
  0x3e   :  { %p1735_p9 = pnand %p1734_p8, %p1728_p5 }
  0x40   :  { %1738 = shalt.err (!%p1735_p9)
}
  0x41   :  { %101 = dma.hbm_to_vmem [thread:$0]  %s2395_s5, 512, %s96_s26, [#allocation13], %s1953_s22, %s1953_s22, %s1954_s23  }
  0x42   :  { %s1739_s15 = scalar_lea.hbm %s2397_s7, 1536 }
  0x43   :  { %p1740_p10 = scmp.ne.s32.totalorder %s2397_s7, %s1739_s15  ;;  %p1743_p11 = scmp.lt.u32.totalorder %s1739_s15, %s2397_s7 }
  0x45   :  { %p1745_p12 = pnand %p1743_p11, %p1740_p10 }
  0x47   :  { %1748 = shalt.err (!%p1745_p12)
}
  0x48   :  { %s1749_s1 = scalar_lea.vmem %s2095_s29, 1536  ;;  %p1754_p0 = scmp.lt.s32.totalorder %s2095_s29, %s2095_s29 }
  0x49   :  { %p1750_p13 = scmp.ne.s32.totalorder %s2095_s29, %s1749_s1  ;;  %p1755_p1 = scmp.lt.s32.totalorder %s1749_s1, %s1749_s1 }
  0x4b   :  { %p1756_p2 = por %p1755_p1, %p1754_p0 }
  0x4d   :  { %p1757_p3 = pnand %p1756_p2, %p1750_p13 }
  0x4f   :  { %1760 = shalt.err (!%p1757_p3)
}
  0x50   :  { %125 = dma.hbm_to_vmem [thread:$0]  %s2397_s7, 1536, %s2095_s29, [#allocation16], %s1953_s22, %s1953_s22, %s1954_s23  }
  0x51   :  { %s1957_s20 = smov [#allocation3]   ;;  %s1958_s3 = smov [#allocation8]  }
  0x52   :  { %s35_s21 = sshll.u32 %s1957_s20, 4  ;;  %s59_s27 = sshll.u32 %s1958_s3, 4  ;;  %s36_s21 = int_to_ptr.vmem [resolvable:$true] %s35_s21  ;;  %s2132_s27 = int_to_ptr.vmem [resolvable:$true] %s59_s27 }
  0x53   :  { %s2415_s24 = sld [smem:[#allocation29_spill]] }
  0x59   :  { %s1761_s15 = scalar_lea.hbm %s2415_s24, 256 }
  0x5a   :  { %p1762_p4 = scmp.ne.s32.totalorder %s2415_s24, %s1761_s15  ;;  %p1765_p5 = scmp.lt.u32.totalorder %s1761_s15, %s2415_s24 }
  0x5c   :  { %p1767_p6 = pnand %p1765_p5, %p1762_p4 }
  0x5e   :  { %1770 = shalt.err (!%p1767_p6)
}
  0x5f   :  { %s1771_s7 = scalar_lea.vmem %s36_s21, 256  ;;  %p1776_p8 = scmp.lt.s32.totalorder %s36_s21, %s36_s21 }
  0x60   :  { %p1772_p7 = scmp.ne.s32.totalorder %s36_s21, %s1771_s7  ;;  %p1777_p9 = scmp.lt.s32.totalorder %s1771_s7, %s1771_s7 }
  0x62   :  { %p1778_p10 = por %p1777_p9, %p1776_p8 }
  0x64   :  { %p1779_p11 = pnand %p1778_p10, %p1772_p7 }
  0x66   :  { %1782 = shalt.err (!%p1779_p11)
}
  0x67   :  { %41 = dma.hbm_to_vmem [thread:$0]  %s2415_s24, 256, %s36_s21, [#allocation4], %s1953_s22, %s1953_s22, %s1954_s23  }
  0x68   :  { %s1783_s20 = scalar_lea.hbm %s2392_s2, 256 }
  0x69   :  { %p1784_p12 = scmp.ne.s32.totalorder %s2392_s2, %s1783_s20  ;;  %p1787_p13 = scmp.lt.u32.totalorder %s1783_s20, %s2392_s2 }
  0x6b   :  { %p1789_p0 = pnand %p1787_p13, %p1784_p12 }
  0x6d   :  { %1792 = shalt.err (!%p1789_p0)
}
  0x6e   :  { %s1793_s28 = scalar_lea.vmem %s2132_s27, 256  ;;  %p1798_p2 = scmp.lt.s32.totalorder %s2132_s27, %s2132_s27 }
  0x6f   :  { %p1794_p1 = scmp.ne.s32.totalorder %s2132_s27, %s1793_s28  ;;  %p1799_p3 = scmp.lt.s32.totalorder %s1793_s28, %s1793_s28 }
  0x71   :  { %p1800_p4 = por %p1799_p3, %p1798_p2 }
  0x73   :  { %p1801_p5 = pnand %p1800_p4, %p1794_p1 }
  0x75   :  { %1804 = shalt.err (!%p1801_p5)
}
  0x76   :  { %65 = dma.hbm_to_vmem [thread:$0]  %s2392_s2, 256, %s2132_s27, [#allocation7], %s1953_s22, %s1953_s22, %s1954_s23  }
  0x77   :  { %s1959_s30 = smov [#allocation11]   ;;  %s1960_s19 = smov [#allocation14]  }
  0x78   :  { %s83_s18 = sshll.u32 %s1959_s30, 4  ;;  %s107_s7 = sshll.u32 %s1960_s19, 4  ;;  %s84_s18 = int_to_ptr.vmem [resolvable:$true] %s83_s18  ;;  %s2169_s7 = int_to_ptr.vmem [resolvable:$true] %s107_s7 }
  0x79   :  { %s1805_s5 = scalar_lea.hbm %s2394_s4, 512 }
  0x7a   :  { %p1806_p6 = scmp.ne.s32.totalorder %s2394_s4, %s1805_s5  ;;  %p1809_p7 = scmp.lt.u32.totalorder %s1805_s5, %s2394_s4 }
  0x7c   :  { %p1811_p8 = pnand %p1809_p7, %p1806_p6 }
  0x7e   :  { %1814 = shalt.err (!%p1811_p8)
}
  0x7f   :  { %s1815_s2 = scalar_lea.vmem %s84_s18, 512  ;;  %p1820_p10 = scmp.lt.s32.totalorder %s84_s18, %s84_s18 }
  0x80   :  { %p1816_p9 = scmp.ne.s32.totalorder %s84_s18, %s1815_s2  ;;  %p1821_p11 = scmp.lt.s32.totalorder %s1815_s2, %s1815_s2 }
  0x82   :  { %p1822_p12 = por %p1821_p11, %p1820_p10 }
  0x84   :  { %p1823_p13 = pnand %p1822_p12, %p1816_p9 }
  0x86   :  { %1826 = shalt.err (!%p1823_p13)
}
  0x87   :  { %89 = dma.hbm_to_vmem [thread:$0]  %s2394_s4, 512, %s84_s18, [#allocation10], %s1953_s22, %s1953_s22, %s1954_s23  }
  0x88   :  { %s1827_s21 = scalar_lea.hbm %s2396_s6, 512 }
  0x89   :  { %p1828_p0 = scmp.ne.s32.totalorder %s2396_s6, %s1827_s21  ;;  %p1831_p1 = scmp.lt.u32.totalorder %s1827_s21, %s2396_s6 }
  0x8b   :  { %p1833_p2 = pnand %p1831_p1, %p1828_p0 }
  0x8d   :  { %1836 = shalt.err (!%p1833_p2)
}
  0x8e   :  { %s1837_s1 = scalar_lea.vmem %s2169_s7, 512  ;;  %p1842_p4 = scmp.lt.s32.totalorder %s2169_s7, %s2169_s7 }
  0x8f   :  { %p1838_p3 = scmp.ne.s32.totalorder %s2169_s7, %s1837_s1  ;;  %p1843_p5 = scmp.lt.s32.totalorder %s1837_s1, %s1837_s1 }
  0x91   :  { %p1844_p6 = por %p1843_p5, %p1842_p4 }
  0x93   :  { %p1845_p7 = pnand %p1844_p6, %p1838_p3 }
  0x95   :  { %1848 = shalt.err (!%p1845_p7)
}
  0x96   :  { %113 = dma.hbm_to_vmem [thread:$0]  %s2396_s6, 512, %s2169_s7, [#allocation13], %s1953_s22, %s1953_s22, %s1954_s23  }
  0x97   :  { %s1961_s5 = smov [#allocation17]   ;;  %s1849_s25 = scalar_lea.hbm %s2401_s11, 2048 }
  0x98   :  { %s137_s26 = sshll.u32 %s1961_s5, 4  ;;  %p1850_p8 = scmp.ne.s32.totalorder %s2401_s11, %s1849_s25  ;;  %s138_s26 = int_to_ptr.vmem [resolvable:$true] %s137_s26 }
  0x99   :  { %p1853_p9 = scmp.lt.u32.totalorder %s1849_s25, %s2401_s11 }
  0x9b   :  { %p1855_p10 = pnand %p1853_p9, %p1850_p8 }
  0x9d   :  { %1858 = shalt.err (!%p1855_p10)
}
  0x9e   :  { %s1859_s28 = scalar_lea.vmem %s138_s26, 2048  ;;  %p1864_p12 = scmp.lt.s32.totalorder %s138_s26, %s138_s26 }
  0x9f   :  { %p1860_p11 = scmp.ne.s32.totalorder %s138_s26, %s1859_s28  ;;  %p1865_p13 = scmp.lt.s32.totalorder %s1859_s28, %s1859_s28 }
  0xa1   :  { %p1866_p0 = por %p1865_p13, %p1864_p12 }
  0xa3   :  { %p1867_p1 = pnand %p1866_p0, %p1860_p11 }
  0xa5   :  { %1870 = shalt.err (!%p1867_p1)
}
  0xa6   :  { %143 = dma.hbm_to_vmem [thread:$0]  %s2401_s11, 2048, %s138_s26, [#allocation16], %s1953_s22, %s1953_s22, %s1954_s23  }
  0xa7   :  { %1937 = dma.done.wait [#allocation4], 256  }
  0xa8   :  { %1938 = vsyncadd [#allocation4], 4294967040 }
  0xa9   :  { %1939 = dma.done.wait [#allocation7], 512  }
  0xaa   :  { %1940 = vsyncadd [#allocation7], 4294966784 }
  0xab   :  { %1941 = dma.done.wait [#allocation10], 768  }
  0xac   :  { %1942 = vsyncadd [#allocation10], 4294966528 }
  0xad   :  { %1943 = dma.done.wait [#allocation13], 1024  }
  0xae   :  { %1944 = vsyncadd [#allocation13], 4294966272 }
  0xaf   :  { %1945 = dma.done.wait [#allocation16], 3584  }
  0xb0   :  { %1946 = vsyncadd [#allocation16], 4294963712  ;;  %vm234_vm0 = vcmask 130048   ;;  %v181_v0 = vld [vmem:[#allocation8] sm:$0xff]  ;;  %v182_v1 = vld [vmem:[#allocation8 + $0x8] sm:$0xff]  ;;  %vm225_vm1 = vcmask 261120   ;;  %v362_v62 = vlaneseq }
  0xb1   :  { %v183_v2 = vmul.f32 0.5, %v181_v0  ;;  %v184_v3 = vmul.f32 0.5, %v182_v1  ;;  %v232_v4 = vld [vmem:[#allocation3] sm:$0xff]  ;;  %v179_v7 = vld [vmem:[#allocation9] sm:$0xff]  ;;  %v180_v8 = vld [vmem:[#allocation9 + $0x8] sm:$0xff]  ;;  %vm1963_vm2 = vmmov 0  }
  0xb2   :  { %1439 = vmatprep.mubr.msk.f32.mxu0 %vm234_vm0, %v232_v4  ;;  %v177_v10 = vld [vmem:[#allocation6] sm:$0xff]  ;;  %v178_v12 = vld [vmem:[#allocation6 + $0x8] sm:$0xff]  ;;  %v233_v18 = vld [vmem:[#allocation3 + $0x8] sm:$0xff]  ;;  %v2230_v63 = vshrl.u32 %v362_v62, 7  ;;  %vm1235_vm3 = vcmask 254976  }
  0xb3   :  { %v185_v5 = vmul.f32 1.442695, %v183_v2  ;;  %v187_v6 = vmul.f32 1.442695, %v184_v3  ;;  %v374_v19 = vld [vmem:[#allocation15] sm:$0xff]  ;;  %v375_v20 = vld [vmem:[#allocation15 + $0x8] sm:$0xff] }
  0xb4   :  { %v376_v21 = vld [vmem:[#allocation15 + $0x10] sm:$0xff]  ;;  %v1534_v22 = vpack.c.bf16 %v375_v20, %v374_v19  ;;  %v377_v23 = vld [vmem:[#allocation15 + $0x18] sm:$0xff]  ;;  %v364_v1 = vsub.s32 0, %v2230_v63 }
  0xb5   :  { %1607 = vpow2.f32 %v185_v5  ;;  %v1538_v24 = vpack.c.bf16 %v377_v23, %v376_v21  ;;  %v2235_v0 = vld [vmem:[%s2399_s9] sm:$0xf] }
  0xb6   :  { %1609 = vpow2.f32 %v187_v6  ;;  %1535 = vmatprep.subr.bf16.mxu1 %v1534_v22  ;;  %v2242_v4 = vld [vmem:[%s2400_s10] sm:$0xf] }
  0xb7   :  { %1537 = vmatpush3.bf16.msra.mxu1 %v1534_v22  ;;  %v1361_v19 = vld [vmem:[%s2398_s8] ss:$0 sm:$0xff] }
  0xb8   :  { %1539 = vmatprep.subr.bf16.mxu1 %v1538_v24 }
  0xbb   :  { %1541 = vmatpush3.bf16.msra.mxu1 %v1538_v24 }
  0xbf   :  { %v1608_v9 = vpop.eup %1607 }
  0xc0   :  { %v1610_v11 = vpop.eup %1609  ;;  %v189_v13 = vmul.f32 %v1608_v9, %v179_v7 }
  0xc1   :  { %v190_v14 = vmul.f32 %v1610_v11, %v180_v8 }
  0xc2   :  { %v191_v15 = vadd.f32 %v189_v13, %v177_v10  ;;  %v522_v13 = vld [vmem:[#allocation15 + $0x20] sm:$0xff] }
  0xc3   :  { %v192_v16 = vadd.f32 %v190_v14, %v178_v12  ;;  %v523_v14 = vld [vmem:[#allocation15 + $0x28] sm:$0xff] }
  0xc4   :  { %226 = vst.msk [vmem:[#allocation19] sm:$0xff] %vm225_vm1, %v191_v15 }
  0xc5   :  { %v1530_v17 = vpack.c.bf16 %v192_v16, %v191_v15  ;;  %227 = vst.msk [vmem:[#allocation19 + $0x8] sm:$0xff] %vm225_vm1, %v192_v16  ;;  %v1542_v15 = vpack.c.bf16 %v523_v14, %v522_v13  ;;  %v524_v16 = vld [vmem:[#allocation15 + $0x30] sm:$0xff]  ;;  %v671_v13 = vld [vmem:[#allocation15 + $0x48] sm:$0xff] }
  0xc7   :  { %1531 = vmatprep.subr.bf16.mxu0 %v1530_v17 }
  0xc8   :  { %1533 = vmatpush3.bf16.msra.mxu0 %v1530_v17  ;;  %v525_v17 = vld [vmem:[#allocation15 + $0x38] sm:$0xff] }
  0xc9   :  { %1543 = vmatprep.subr.bf16.mxu0 %v1542_v15 }
  0xcb   :  { %1440 = vmatmul.mubr.msk.f32.vlgmr.msra.gmra.mrb[0].mxu0 %vm234_vm0, %v233_v18  ;;  %v1546_v18 = vpack.c.bf16 %v525_v17, %v524_v16  ;;  %v673_v16 = vld [vmem:[#allocation15 + $0x58] sm:$0xff] }
  0xcc   :  { %1545 = vmatpush3.bf16.msra.mxu0 %v1542_v15  ;;  %v672_v15 = vld [vmem:[#allocation15 + $0x50] sm:$0xff] }
  0xcd   :  { %1547 = vmatprep.subr.bf16.mxu0 %v1546_v18  ;;  %v1554_v17 = vpack.c.bf16 %v673_v16, %v672_v15 }
  0xd0   :  { %1549 = vmatpush3.bf16.msra.mxu0 %v1546_v18  ;;  %v1366_v18 = vld [vmem:[%s2398_s8 + $0x1] ss:$0 sm:$0xff] }
 0x19e   :  { %v1441_v25 = vpop.f32.mrb[0].mxu0 }
 0x19f   :  { %v1360_v26 = vmul.f32 -1.442695, %v1441_v25  ;;  %v307_v27 = vpop.f32.mrb[1].mxu0 }
 0x1a0   :  { %v1359_v28 = vmul.f32 -1.442695, %v307_v27 }
 0x1a1   :  { %1611 = vpow2.f32 %v1360_v26 }
 0x1a2   :  { %1613 = vpow2.f32 %v1359_v28 }
 0x1ab   :  { %v1612_v29 = vpop.eup %1611 }
 0x1ac   :  { %v1614_v30 = vpop.eup %1613  ;;  %v323_v31 = vadd.f32 1.0, %v1612_v29 }
 0x1ad   :  { %v322_v32 = vadd.f32 1.0, %v1614_v30 }
 0x1ae   :  { %1615 = vrcp.f32 %v323_v31 }
 0x1af   :  { %1617 = vrcp.f32 %v322_v32 }
 0x1b8   :  { %v1616_v33 = vpop.eup %1615 }
 0x1b9   :  { %v1618_v34 = vpop.eup %1617  ;;  %v329_v35 = vmul.f32 %v1616_v33, %v1441_v25 }
 0x1ba   :  { %v328_v36 = vmul.f32 %v1618_v34, %v307_v27 }
 0x1bb   :  { %v333_v37 = vsel %vm225_vm1, %v329_v35, 0.0  ;;  %v344_v38 = vmul.f32 %v329_v35, %v329_v35 }
 0x1bc   :  { %v332_v39 = vsel %vm225_vm1, %v328_v36, 0.0  ;;  %v343_v40 = vmul.f32 %v328_v36, %v328_v36 }
 0x1bd   :  { %v346_v41 = vsel %vm225_vm1, %v344_v38, 0.0  ;;  %v334_v42 = vadd.f32 %v333_v37, %v332_v39 }
 0x1be   :  { %v345_v43 = vsel %vm225_vm1, %v343_v40, 0.0 }
 0x1bf   :  { %v335_v44 = vrot.slane %v334_v42, 4  ;;  %v347_v45 = vadd.f32 %v346_v41, %v345_v43 }
 0x1c1   :  { %v336_v46 = vadd.f32 %v335_v44, %v334_v42  ;;  %v348_v47 = vrot.slane %v347_v45, 4 }
 0x1c3   :  { %v337_v48 = vrot.slane %v336_v46, 2  ;;  %v349_v49 = vadd.f32 %v348_v47, %v347_v45 }
 0x1c5   :  { %v338_v50 = vadd.f32 %v337_v48, %v336_v46  ;;  %v350_v51 = vrot.slane %v349_v49, 2 }
 0x1c7   :  { %v351_v52 = vadd.f32 %v350_v51, %v349_v49  ;;  %v339_v53 = vrot.slane %v338_v50, 1 }
 0x1c9   :  { %v352_v54 = vrot.slane %v351_v52, 1  ;;  %v340_v55 = vadd.f32 %v339_v53, %v338_v50 }
 0x1cb   :  { %v353_v56 = vadd.f32 %v352_v54, %v351_v52  ;;  %v342_v57 = vmul.f32 0.0625, %v340_v55 }
 0x1cd   :  { %v354_v58 = vmul.f32 0.0625, %v353_v56  ;;  %v355_v59 = vmul.f32 %v342_v57, %v342_v57 }
 0x1cf   :  { %v356_v60 = vsub.f32 %v354_v58, %v355_v59 }
 0x1d1   :  { %v357_v61 = vadd.f32 1e-05, %v356_v60 }
 0x1d3   :  { %1619 = vrsqrt.f32 %v357_v61  ;;  %v511_v61 = vsub.s32 1, %v2230_v63 }
 0x1dd   :  { %v1620_v2 = vpop.eup %1619 }
 0x1de   :  { %v359_v3 = vmul.f32 %v1620_v2, %v2235_v0 }
 0x1e0   :  { %v360_v5 = vmul.f32 %v359_v3, %v342_v57  ;;  %v365_v6 = vrot.slane %v359_v3, %v364_v1 }
 0x1e2   :  { %v361_v7 = vsub.f32 %v2242_v4, %v360_v5  ;;  %v366_v8 = vmul.f32 %v365_v6, %v328_v36  ;;  %v367_v9 = vmul.f32 %v365_v6, %v329_v35 }
 0x1e4   :  { %v371_v10 = vrot.slane %v361_v7, %v364_v1 }
 0x1e6   :  { %v372_v11 = vadd.f32 %v371_v10, %v366_v8  ;;  %v373_v12 = vadd.f32 %v371_v10, %v367_v9 }
 0x1e8   :  { %1450 = vmatprep.mubr.msk.f32.mxu1 %vm225_vm1, %v372_v11 }
 0x1e9   :  { %1451 = vmatmul.mubr.msk.f32.vlgmr.msra.gmra.mrb[0].mxu1 %vm225_vm1, %v373_v12 }
 0x2bc   :  { %v1452_v20 = vpop.f32.mrb[0].mxu1 }
 0x2bd   :  { %v461_v21 = vadd.f32 %v1452_v20, %v1361_v19  ;;  %v455_v22 = vpop.f32.mrb[1].mxu1 }
 0x2be   :  { %v456_v23 = vadd.f32 %v1361_v19, %v455_v22 }
 0x2bf   :  { %v1365_v24 = vmul.f32 -1.442695, %v461_v21 }
 0x2c0   :  { %v1364_v25 = vmul.f32 -1.442695, %v456_v23 }
 0x2c1   :  { %1621 = vpow2.f32 %v1365_v24 }
 0x2c2   :  { %1623 = vpow2.f32 %v1364_v25 }
 0x2cb   :  { %v1622_v26 = vpop.eup %1621 }
 0x2cc   :  { %v1624_v27 = vpop.eup %1623  ;;  %v471_v28 = vadd.f32 1.0, %v1622_v26 }
 0x2cd   :  { %v470_v29 = vadd.f32 1.0, %v1624_v27 }
 0x2ce   :  { %1625 = vrcp.f32 %v471_v28 }
 0x2cf   :  { %1627 = vrcp.f32 %v470_v29 }
 0x2d8   :  { %v1626_v30 = vpop.eup %1625 }
 0x2d9   :  { %v1628_v31 = vpop.eup %1627  ;;  %v477_v32 = vmul.f32 %v1626_v30, %v461_v21 }
 0x2da   :  { %v476_v33 = vmul.f32 %v1628_v31, %v456_v23 }
 0x2db   :  { %v479_v34 = vadd.f32 %v477_v32, %v373_v12  ;;  %v670_v12 = vld [vmem:[#allocation15 + $0x40] sm:$0xff] }
 0x2dc   :  { %v478_v35 = vadd.f32 %v476_v33, %v372_v11  ;;  %v1550_v14 = vpack.c.bf16 %v671_v13, %v670_v12  ;;  %v202_v12 = vld [vmem:[#allocation12 + $0x8] sm:$0xff] }
 0x2dd   :  { %v481_v36 = vsel %vm225_vm1, %v479_v34, 0.0  ;;  %v491_v37 = vmul.f32 %v479_v34, %v479_v34 }
 0x2de   :  { %v480_v38 = vsel %vm225_vm1, %v478_v35, 0.0  ;;  %v490_v39 = vmul.f32 %v478_v35, %v478_v35  ;;  %1551 = vmatprep.subr.bf16.mxu1 %v1550_v14 }
 0x2df   :  { %v493_v40 = vsel %vm225_vm1, %v491_v37, 0.0  ;;  %v482_v41 = vadd.f32 %v481_v36, %v480_v38  ;;  %1553 = vmatpush3.bf16.msra.mxu1 %v1550_v14  ;;  %v206_v14 = vmul.f32 0.5, %v202_v12 }
 0x2e0   :  { %v492_v42 = vsel %vm225_vm1, %v490_v39, 0.0  ;;  %1555 = vmatprep.subr.bf16.mxu1 %v1554_v17 }
 0x2e1   :  { %v483_v43 = vrot.slane %v482_v41, 4  ;;  %v494_v44 = vadd.f32 %v493_v40, %v492_v42  ;;  %v211_v16 = vmul.f32 1.442695, %v206_v14 }
 0x2e3   :  { %v484_v45 = vadd.f32 %v483_v43, %v482_v41  ;;  %v495_v46 = vrot.slane %v494_v44, 4  ;;  %1557 = vmatpush3.bf16.msra.mxu1 %v1554_v17  ;;  %v203_v17 = vld [vmem:[#allocation12 + $0x10] sm:$0xff] }
 0x2e5   :  { %v485_v47 = vrot.slane %v484_v45, 2  ;;  %v496_v48 = vadd.f32 %v495_v46, %v494_v44 }
 0x2e7   :  { %v486_v49 = vadd.f32 %v485_v47, %v484_v45  ;;  %v497_v50 = vrot.slane %v496_v48, 2 }
 0x2e9   :  { %v487_v51 = vrot.slane %v486_v49, 1  ;;  %v498_v52 = vadd.f32 %v497_v50, %v496_v48 }
 0x2eb   :  { %v488_v53 = vadd.f32 %v487_v51, %v486_v49  ;;  %v499_v54 = vrot.slane %v498_v52, 1 }
 0x2ed   :  { %v489_v55 = vmul.f32 0.0625, %v488_v53  ;;  %v500_v56 = vadd.f32 %v499_v54, %v498_v52 }
 0x2ef   :  { %v501_v57 = vmul.f32 0.0625, %v500_v56  ;;  %v502_v58 = vmul.f32 %v489_v55, %v489_v55 }
 0x2f1   :  { %v503_v59 = vsub.f32 %v501_v57, %v502_v58 }
 0x2f3   :  { %v504_v60 = vadd.f32 1e-05, %v503_v59 }
 0x2f5   :  { %1629 = vrsqrt.f32 %v504_v60  ;;  %v659_v60 = vsub.s32 2, %v2230_v63 }
 0x2ff   :  { %v1630_v1 = vpop.eup %1629 }
 0x300   :  { %v506_v2 = vmul.f32 %v1630_v1, %v2235_v0 }
 0x302   :  { %v512_v3 = vrot.slane %v506_v2, %v511_v61  ;;  %v507_v5 = vmul.f32 %v506_v2, %v489_v55 }
 0x304   :  { %v513_v6 = vmul.f32 %v512_v3, %v478_v35  ;;  %v514_v7 = vmul.f32 %v512_v3, %v479_v34  ;;  %v508_v8 = vsub.f32 %v2242_v4, %v507_v5 }
 0x306   :  { %v518_v9 = vrot.slane %v508_v8, %v511_v61 }
 0x308   :  { %v519_v10 = vadd.f32 %v518_v9, %v513_v6  ;;  %v520_v11 = vadd.f32 %v518_v9, %v514_v7 }
 0x30a   :  { %1461 = vmatprep.mubr.msk.f32.mxu0 %vm225_vm1, %v519_v10 }
 0x30b   :  { %1462 = vmatmul.mubr.msk.f32.vlgmr.msra.gmra.mrb[2].mxu0 %vm225_vm1, %v520_v11 }
 0x3de   :  { %v1463_v19 = vpop.f32.mrb[2].mxu0 }
 0x3df   :  { %v609_v20 = vadd.f32 %v1463_v19, %v1366_v18  ;;  %v603_v21 = vpop.f32.mrb[3].mxu0  ;;  %v207_v19 = vmul.f32 0.5, %v203_v17 }
 0x3e0   :  { %v604_v22 = vadd.f32 %v1366_v18, %v603_v21  ;;  %v204_v18 = vld [vmem:[#allocation12 + $0x18] sm:$0xff] }
 0x3e1   :  { %v1370_v23 = vmul.f32 -1.442695, %v609_v20  ;;  %v213_v21 = vmul.f32 1.442695, %v207_v19 }
 0x3e2   :  { %v1369_v24 = vmul.f32 -1.442695, %v604_v22 }
 0x3e3   :  { %1631 = vpow2.f32 %v1370_v23 }
 0x3e4   :  { %1633 = vpow2.f32 %v1369_v24  ;;  %v197_v24 = vld [vmem:[#allocation14] sm:$0xff] }
 0x3ed   :  { %v1632_v25 = vpop.eup %1631 }
 0x3ee   :  { %v1634_v26 = vpop.eup %1633  ;;  %v619_v27 = vadd.f32 1.0, %v1632_v25  ;;  %v198_v25 = vld [vmem:[#allocation14 + $0x8] sm:$0xff] }
 0x3ef   :  { %v618_v28 = vadd.f32 1.0, %v1634_v26 }
 0x3f0   :  { %1635 = vrcp.f32 %v619_v27 }
 0x3f1   :  { %1637 = vrcp.f32 %v618_v28  ;;  %v193_v28 = vld [vmem:[#allocation11] sm:$0xff] }
 0x3fa   :  { %v1636_v29 = vpop.eup %1635 }
 0x3fb   :  { %v1638_v30 = vpop.eup %1637  ;;  %v625_v31 = vmul.f32 %v1636_v29, %v609_v20  ;;  %v208_v20 = vmul.f32 0.5, %v204_v18  ;;  %v194_v29 = vld [vmem:[#allocation11 + $0x8] sm:$0xff] }
 0x3fc   :  { %v624_v32 = vmul.f32 %v1638_v30, %v604_v22 }
 0x3fd   :  { %v627_v33 = vadd.f32 %v625_v31, %v520_v11  ;;  %v201_v11 = vld [vmem:[#allocation12] sm:$0xff]  ;;  %v215_v22 = vmul.f32 1.442695, %v208_v20 }
 0x3fe   :  { %v626_v34 = vadd.f32 %v624_v32, %v519_v10  ;;  %v205_v13 = vmul.f32 0.5, %v201_v11 }
 0x3ff   :  { %v629_v35 = vsel %vm225_vm1, %v627_v33, 0.0  ;;  %v639_v36 = vmul.f32 %v627_v33, %v627_v33 }
 0x400   :  { %v628_v37 = vsel %vm225_vm1, %v626_v34, 0.0  ;;  %v638_v38 = vmul.f32 %v626_v34, %v626_v34  ;;  %v209_v15 = vmul.f32 1.442695, %v205_v13 }
 0x401   :  { %v641_v39 = vsel %vm225_vm1, %v639_v36, 0.0  ;;  %v630_v40 = vadd.f32 %v629_v35, %v628_v37  ;;  %v200_v35 = vld [vmem:[#allocation14 + $0x18] sm:$0xff] }
 0x402   :  { %v640_v41 = vsel %vm225_vm1, %v638_v38, 0.0 }
 0x403   :  { %v631_v42 = vrot.slane %v630_v40, 4  ;;  %v642_v43 = vadd.f32 %v641_v39, %v640_v41  ;;  %v195_v39 = vld [vmem:[#allocation11 + $0x10] sm:$0xff] }
 0x405   :  { %v632_v44 = vadd.f32 %v631_v42, %v630_v40  ;;  %v643_v45 = vrot.slane %v642_v43, 4  ;;  %v196_v40 = vld [vmem:[#allocation11 + $0x18] sm:$0xff] }
 0x407   :  { %v633_v46 = vrot.slane %v632_v44, 2  ;;  %v644_v47 = vadd.f32 %v643_v45, %v642_v43  ;;  %v1371_v45 = vld [vmem:[%s2398_s8 + $0x2] ss:$0 sm:$0xff] }
 0x409   :  { %v634_v48 = vadd.f32 %v633_v46, %v632_v44  ;;  %v645_v49 = vrot.slane %v644_v47, 2 }
 0x40b   :  { %v635_v50 = vrot.slane %v634_v48, 1  ;;  %v646_v51 = vadd.f32 %v645_v49, %v644_v47 }
 0x40d   :  { %v636_v52 = vadd.f32 %v635_v50, %v634_v48  ;;  %v647_v53 = vrot.slane %v646_v51, 1 }
 0x40f   :  { %v637_v54 = vmul.f32 0.0625, %v636_v52  ;;  %v648_v55 = vadd.f32 %v647_v53, %v646_v51 }
 0x411   :  { %v649_v56 = vmul.f32 0.0625, %v648_v55  ;;  %v650_v57 = vmul.f32 %v637_v54, %v637_v54 }
 0x413   :  { %v651_v58 = vsub.f32 %v649_v56, %v650_v57 }
 0x415   :  { %v652_v59 = vadd.f32 1e-05, %v651_v58 }
 0x417   :  { %1639 = vrsqrt.f32 %v652_v59 }
 0x418   :  { %1641 = vpow2.f32 %v209_v15 }
 0x419   :  { %1643 = vpow2.f32 %v211_v16 }
 0x41a   :  { %1645 = vpow2.f32 %v213_v21 }
 0x41b   :  { %1647 = vpow2.f32 %v215_v22 }
 0x421   :  { %v1640_v61 = vpop.eup %1639 }
 0x422   :  { %v654_v1 = vmul.f32 %v1640_v61, %v2235_v0  ;;  %v1642_v23 = vpop.eup %1641 }
 0x423   :  { %v1644_v26 = vpop.eup %1643  ;;  %v217_v27 = vmul.f32 %v1642_v23, %v197_v24 }
 0x424   :  { %v660_v2 = vrot.slane %v654_v1, %v659_v60  ;;  %v655_v3 = vmul.f32 %v654_v1, %v637_v54  ;;  %v218_v30 = vmul.f32 %v1644_v26, %v198_v25  ;;  %v1646_v32 = vpop.eup %1645 }
 0x425   :  { %v221_v31 = vadd.f32 %v217_v27, %v193_v28  ;;  %v1648_v36 = vpop.eup %1647  ;;  %v807_v27 = vsub.s32 3, %v2230_v63 }
 0x426   :  { %v661_v5 = vmul.f32 %v660_v2, %v626_v34  ;;  %v662_v6 = vmul.f32 %v660_v2, %v627_v33  ;;  %v656_v7 = vsub.f32 %v2242_v4, %v655_v3  ;;  %v222_v33 = vadd.f32 %v218_v30, %v194_v29  ;;  %v199_v34 = vld [vmem:[#allocation14 + $0x10] sm:$0xff] }
 0x427   :  { %228 = vst.msk [vmem:[#allocation21] sm:$0xff] %vm225_vm1, %v221_v31  ;;  %v219_v37 = vmul.f32 %v1646_v32, %v199_v34  ;;  %v220_v41 = vmul.f32 %v1648_v36, %v200_v35 }
 0x428   :  { %v666_v8 = vrot.slane %v656_v7, %v659_v60  ;;  %229 = vst.msk [vmem:[#allocation21 + $0x8] sm:$0xff] %vm225_vm1, %v222_v33  ;;  %v1558_v38 = vpack.c.bf16 %v222_v33, %v221_v31 }
 0x429   :  { %v223_v42 = vadd.f32 %v219_v37, %v195_v39  ;;  %v224_v43 = vadd.f32 %v220_v41, %v196_v40  ;;  %v908_v39 = vld [vmem:[#allocation17 + $0x28] sm:$0xff]  ;;  %v901_v40 = vld [vmem:[#allocation17] sm:$0xff] }
 0x42a   :  { %v2269_v9 = vadd.f32 %v666_v8, %v661_v5  ;;  %v2271_v10 = vadd.f32 %v666_v8, %v662_v6  ;;  %1559 = vmatprep.subr.bf16.mxu0 %v1558_v38  ;;  %v902_v41 = vld [vmem:[#allocation17 + $0x8] sm:$0xff] }
 0x42b   :  { %1561 = vmatpush3.bf16.msra.mxu0 %v1558_v38  ;;  %230 = vst.msk [vmem:[#allocation21 + $0x10] sm:$0xff] %vm225_vm1, %v223_v42  ;;  %231 = vst.msk [vmem:[#allocation21 + $0x18] sm:$0xff] %vm225_vm1, %v224_v43  ;;  %v1562_v44 = vpack.c.bf16 %v224_v43, %v223_v42  ;;  %v907_v38 = vld [vmem:[#allocation17 + $0x20] sm:$0xff]  ;;  %v1962_v42 = vmov 0.0|0.0   ;;  %v909_v43 = vld [vmem:[#allocation17 + $0x30] sm:$0xff] }
 0x42c   :  { %1472 = vmatprep.mubr.msk.f32.mxu1 %vm225_vm1, %v2269_v9  ;;  %v1567_v63 = vpack.c.bf16 %v908_v39, %v907_v38  ;;  %1566 = vmatprep.subr.bf16.mxu1 %v1962_v42  ;;  %v1232_v39 = vld [vmem:[%s2403_s13] sm:$0x3] }
 0x42d   :  { %1473 = vmatmul.mubr.msk.f32.vlgmr.msra.gmra.mrb[2].mxu1 %vm225_vm1, %v2271_v10  ;;  %1563 = vmatprep.subr.bf16.mxu0 %v1562_v44 }
 0x42e   :  { %1568 = vmatpush3.bf16.msra.mxu1 %v1567_v63  ;;  %v1386_v63 = vld [vmem:[%s2404_s14 + $0x6] sm:$0x3] }
 0x42f   :  { %1565 = vmatpush3.bf16.msra.mxu0 %v1562_v44  ;;  %v910_v44 = vld [vmem:[#allocation17 + $0x38] sm:$0xff]  ;;  %1569 = vmatprep.subr.bf16.mxu1 %v1962_v42 }
 0x430   :  { %1572 = vmatprep.subr.bf16.mxu0 %v1962_v42 }
 0x500   :  { %v1474_v46 = vpop.f32.mrb[2].mxu1 }
 0x501   :  { %v757_v47 = vadd.f32 %v1474_v46, %v1371_v45  ;;  %v751_v48 = vpop.f32.mrb[3].mxu1  ;;  %v904_v46 = vld [vmem:[#allocation17 + $0x18] sm:$0xff] }
 0x502   :  { %v752_v49 = vadd.f32 %v1371_v45, %v751_v48  ;;  %v1570_v45 = vpack.c.bf16 %v910_v44, %v909_v43  ;;  %v1964_v48 = vmov 0.0  }
 0x503   :  { %v1375_v50 = vmul.f32 -1.442695, %v757_v47  ;;  %1494 = vmatprep.mubr.msk.f32.mxu1 %vm1963_vm2, %v1964_v48 }
 0x504   :  { %v1374_v51 = vmul.f32 -1.442695, %v752_v49  ;;  %1571 = vmatpush3.bf16.msra.mxu1 %v1570_v45 }
 0x505   :  { %1649 = vpow2.f32 %v1375_v50  ;;  %1578 = vmatprep.subr.bf16.mxu1 %v1962_v42 }
 0x506   :  { %1651 = vpow2.f32 %v1374_v51  ;;  %v1059_v51 = vld [vmem:[#allocation17 + $0x40] sm:$0xff] }
 0x50f   :  { %v1650_v52 = vpop.eup %1649 }
 0x510   :  { %v1652_v53 = vpop.eup %1651  ;;  %v767_v54 = vadd.f32 1.0, %v1650_v52  ;;  %v1060_v52 = vld [vmem:[#allocation17 + $0x48] sm:$0xff] }
 0x511   :  { %v766_v55 = vadd.f32 1.0, %v1652_v53  ;;  %v1139_v53 = vld [vmem:[#allocation17 + $0x60] sm:$0xff] }
 0x512   :  { %1653 = vrcp.f32 %v767_v54  ;;  %v1140_v54 = vld [vmem:[#allocation17 + $0x68] sm:$0xff] }
 0x513   :  { %1655 = vrcp.f32 %v766_v55  ;;  %v1384_v55 = vld [vmem:[%s2404_s14 + $0x2] sm:$0x3] }
 0x51c   :  { %v1654_v56 = vpop.eup %1653 }
 0x51d   :  { %v1656_v57 = vpop.eup %1655  ;;  %v773_v58 = vmul.f32 %v1654_v56, %v757_v47  ;;  %v1244_v56 = vld [vmem:[%s2404_s14] sm:$0x3] }
 0x51e   :  { %v772_v59 = vmul.f32 %v1656_v57, %v752_v49  ;;  %v1061_v57 = vld [vmem:[#allocation17 + $0x50] sm:$0xff] }
 0x51f   :  { %v775_v60 = vadd.f32 %v773_v58, %v2271_v10  ;;  %v1385_v58 = vld [vmem:[%s2404_s14 + $0x4] sm:$0x3] }
 0x520   :  { %v774_v61 = vadd.f32 %v772_v59, %v2269_v9  ;;  %v1579_v59 = vpack.c.bf16 %v1060_v52, %v1059_v51 }
 0x521   :  { %v777_v1 = vsel %vm225_vm1, %v775_v60, 0.0  ;;  %v787_v2 = vmul.f32 %v775_v60, %v775_v60 }
 0x522   :  { %v776_v3 = vsel %vm225_vm1, %v774_v61, 0.0  ;;  %v786_v5 = vmul.f32 %v774_v61, %v774_v61 }
 0x523   :  { %v789_v6 = vsel %vm225_vm1, %v787_v2, 0.0  ;;  %v778_v7 = vadd.f32 %v777_v1, %v776_v3  ;;  %v1141_v1 = vld [vmem:[#allocation17 + $0x70] sm:$0xff]  ;;  %v1142_v2 = vld [vmem:[#allocation17 + $0x78] sm:$0xff] }
 0x524   :  { %v788_v8 = vsel %vm225_vm1, %v786_v5, 0.0 }
 0x525   :  { %v779_v11 = vrot.slane %v778_v7, 4  ;;  %v790_v12 = vadd.f32 %v789_v6, %v788_v8 }
 0x527   :  { %v780_v13 = vadd.f32 %v779_v11, %v778_v7  ;;  %v791_v14 = vrot.slane %v790_v12, 4 }
 0x529   :  { %v781_v15 = vrot.slane %v780_v13, 2  ;;  %v792_v16 = vadd.f32 %v791_v14, %v790_v12 }
 0x52b   :  { %v782_v10 = vadd.f32 %v781_v15, %v780_v13  ;;  %v793_v17 = vrot.slane %v792_v16, 2 }
 0x52d   :  { %v783_v9 = vrot.slane %v782_v10, 1  ;;  %v794_v18 = vadd.f32 %v793_v17, %v792_v16 }
 0x52f   :  { %v784_v19 = vadd.f32 %v783_v9, %v782_v10  ;;  %v795_v20 = vrot.slane %v794_v18, 1  ;;  %v1588_v10 = vpack.c.bf16 %v1142_v2, %v1141_v1 }
 0x531   :  { %v785_v21 = vmul.f32 0.0625, %v784_v19  ;;  %v796_v22 = vadd.f32 %v795_v20, %v794_v18 }
 0x533   :  { %v797_v23 = vmul.f32 0.0625, %v796_v22  ;;  %v798_v24 = vmul.f32 %v785_v21, %v785_v21 }
 0x535   :  { %v799_v25 = vsub.f32 %v797_v23, %v798_v24 }
 0x537   :  { %v800_v26 = vadd.f32 1e-05, %v799_v25 }
 0x539   :  { %1657 = vrsqrt.f32 %v800_v26 }
 0x543   :  { %v1658_v28 = vpop.eup %1657 }
 0x544   :  { %v802_v29 = vmul.f32 %v1658_v28, %v2235_v0  ;;  %v1573_v0 = vpack.c.bf16 %v902_v41, %v901_v40 }
 0x546   :  { %v808_v30 = vrot.slane %v802_v29, %v807_v27  ;;  %v803_v31 = vmul.f32 %v802_v29, %v785_v21 }
 0x548   :  { %v809_v32 = vmul.f32 %v808_v30, %v774_v61  ;;  %v810_v33 = vmul.f32 %v808_v30, %v775_v60  ;;  %v804_v34 = vsub.f32 %v2242_v4, %v803_v31  ;;  %v903_v4 = vld [vmem:[#allocation17 + $0x10] sm:$0xff]  ;;  %v1585_v60 = vpack.c.bf16 %v1140_v54, %v1139_v53  ;;  %v1062_v61 = vld [vmem:[#allocation17 + $0x58] sm:$0xff] }
 0x549   :  { %v1576_v47 = vpack.c.bf16 %v904_v46, %v903_v4  ;;  %v1582_v13 = vpack.c.bf16 %v1062_v61, %v1061_v57 }
 0x54a   :  { %v814_v35 = vrot.slane %v804_v34, %v807_v27 }
 0x54c   :  { %v815_v36 = vadd.f32 %v814_v35, %v809_v32  ;;  %v816_v37 = vadd.f32 %v814_v35, %v810_v33  ;;  %v1382_v32 = vld [vmem:[%s2402_s12] ss:$0 sm:$0xff]  ;;  %s1965_s12 = smov [#allocation19]  }
 0x54d   :  { %s1322_s13 = sshll.u32 %s1965_s12, 4  ;;  %s1323_s13 = int_to_ptr.vmem [resolvable:$true] %s1322_s13 }
 0x54e   :  { %1483 = vmatprep.mubr.msk.f32.mxu0 %vm225_vm1, %v815_v36  ;;  %s1871_s14 = scalar_lea.vmem %s1323_s13, 256  ;;  %p1876_p3 = scmp.lt.s32.totalorder %s1323_s13, %s1323_s13 }
 0x54f   :  { %1484 = vmatmul.mubr.msk.f32.vlgmr.msra.gmra.mrb[4].mxu0 %vm225_vm1, %v816_v37  ;;  %p1872_p2 = scmp.ne.s32.totalorder %s1323_s13, %s1871_s14  ;;  %p1877_p4 = scmp.lt.s32.totalorder %s1871_s14, %s1871_s14 }
 0x550   :  { %1574 = vmatpush3.bf16.msra.mxu0 %v1573_v0  ;;  %1505 = vmatprep.mubr.msk.f32.mxu0 %vm1963_vm2, %v1964_v48 }
 0x551   :  { %1575 = vmatprep.subr.bf16.mxu0 %v1962_v42  ;;  %p1878_p5 = por %p1877_p4, %p1876_p3 }
 0x553   :  { %p1879_p6 = pnand %p1878_p5, %p1872_p2 }
 0x554   :  { %1577 = vmatpush3.bf16.msra.mxu0 %v1576_v47 }
 0x555   :  { %1584 = vmatprep.subr.bf16.mxu0 %v1962_v42 }
 0x622   :  { %v1485_v49 = vpop.f32.mrb[4].mxu0 }
 0x623   :  { %899 = vst.msk [vmem:[#allocation2 + $0x8] sm:$0xff] %vm225_vm1, %v1485_v49  ;;  %v889_v50 = vpop.f32.mrb[5].mxu0 }
 0x624   :  { %898 = vst.msk [vmem:[#allocation2] sm:$0xff] %vm225_vm1, %v889_v50 }
 0x62a   :  { %v1258_v3 = vld [vmem:[#allocation2 + $0xa] sm:$0x3]  ;;  %v1243_v5 = vld [vmem:[#allocation2 + $0x8] sm:$0x3]  ;;  %v1274_v6 = vld [vmem:[#allocation2 + $0xc] sm:$0x3] }
 0x62b   :  { %v905_v7 = vld [vmem:[#allocation2 + $0x2] sm:$0x3]  ;;  %v900_v8 = vld [vmem:[#allocation2] sm:$0x3]  ;;  %v2308_v11 = vadd.f32 %v1384_v55, %v1258_v3  ;;  %v2310_v12 = vadd.f32 %v1244_v56, %v1243_v5  ;;  %v2314_v14 = vadd.f32 %v1385_v58, %v1274_v6  ;;  %v1057_v19 = vld [vmem:[#allocation2 + $0x4] sm:$0x3] }
 0x62c   :  { %1495 = vmatmul.mubr.msk.f32.vlgmr.msra.gmra.mrb[4].mxu1 %vm225_vm1, %v905_v7  ;;  %1506 = vmatmul.mubr.msk.f32.vlgmr.msra.gmra.mrb[6].mxu0 %vm225_vm1, %v900_v8  ;;  %v1137_v20 = vld [vmem:[#allocation2 + $0x6] sm:$0x3]  ;;  %v1290_v40 = vld [vmem:[#allocation2 + $0xe] sm:$0x3] }
 0x62d   :  { %1580 = vmatpush3.bf16.msra.mxu1 %v1579_v59  ;;  %1586 = vmatpush3.bf16.msra.mxu0 %v1585_v60  ;;  %v1262_v15 = vmul.f32 %v2308_v11, %v2308_v11  ;;  %v1246_v16 = vmul.f32 %v2310_v12, %v2310_v12  ;;  %v1278_v18 = vmul.f32 %v2314_v14, %v2314_v14 }
 0x62e   :  { %1581 = vmatprep.subr.bf16.mxu1 %v1962_v42  ;;  %1587 = vmatprep.subr.bf16.mxu0 %v1962_v42  ;;  %v1293_v0 = vadd.f32 %v1386_v63, %v1290_v40 }
 0x62f   :  { %v1263_v17 = vsel %vm1235_vm3, %v1262_v15, 0.0  ;;  %v1247_v9 = vsel %vm1235_vm3, %v1246_v16, 0.0  ;;  %1516 = vmatprep.mubr.msk.f32.mxu1 %vm1963_vm2, %v1964_v48  ;;  %1527 = vmatprep.mubr.msk.f32.mxu0 %vm1963_vm2, %v1964_v48  ;;  %v1279_v21 = vsel %vm1235_vm3, %v1278_v18, 0.0 }
 0x630   :  { %1264 = vadd.xlane.f32.xlu1 %v1263_v17  ;;  %1248 = vadd.xlane.f32.xlu0 %v1247_v9  ;;  %v1294_v4 = vmul.f32 %v1293_v0, %v1293_v0 }
 0x631   :  { %1583 = vmatpush3.bf16.msra.mxu1 %v1582_v13  ;;  %1589 = vmatpush3.bf16.msra.mxu0 %v1588_v10 }
 0x632   :  { %v1295_v45 = vsel %vm1235_vm3, %v1294_v4, 0.0 }
 0x634   :  { %1517 = vmatmul.mubr.msk.f32.vlgmr.msra.gmra.mrb[6].mxu1 %vm225_vm1, %v1057_v19  ;;  %1528 = vmatmul.mubr.msk.f32.vlgmr.msra.gmra.mrb[8].mxu0 %vm225_vm1, %v1137_v20 }
 0x635   :  { %1280 = vadd.xlane.f32.xlu1 %v1279_v21 }
 0x6bd   :  { %v1265_v46 = vpop.xlane.xlu1 %1264  ;;  %v1249_v47 = vpop.xlane.xlu0 %1248 }
 0x6c2   :  { %v1281_v48 = vpop.xlane.xlu1 %1280 }
 0x6ff   :  { %v980_v22 = vpop.f32.mrb[4].mxu1  ;;  %v1053_v23 = vpop.f32.mrb[6].mxu0 }
 0x700   :  { %v1054_v24 = vadd.f32 %v1053_v23, %v980_v22  ;;  %v1496_v25 = vpop.f32.mrb[5].mxu1  ;;  %v1507_v26 = vpop.f32.mrb[7].mxu0 }
 0x707   :  { %v1132_v27 = vpop.f32.mrb[6].mxu1  ;;  %v1212_v28 = vpop.f32.mrb[8].mxu0 }
 0x708   :  { %v1136_v29 = vadd.f32 %v1132_v27, %v1054_v24  ;;  %v1518_v30 = vpop.f32.mrb[7].mxu1  ;;  %v1529_v31 = vpop.f32.mrb[9].mxu0 }
 0x70a   :  { %v1216_v33 = vadd.f32 %v1212_v28, %v1136_v29 }
 0x70c   :  { %v1224_v34 = vadd.f32 %v1382_v32, %v1216_v33 }
 0x70e   :  { %v1383_v35 = vmul.f32 -1.442695, %v1224_v34 }
 0x710   :  { %1659 = vpow2.f32 %v1383_v35 }
 0x71a   :  { %v1660_v36 = vpop.eup %1659 }
 0x71b   :  { %v1228_v37 = vadd.f32 1.0, %v1660_v36 }
 0x71d   :  { %1661 = vrcp.f32 %v1228_v37 }
 0x71e   :  { %1663 = vrsqrt.f32 %v1265_v46 }
 0x71f   :  { %1665 = vrsqrt.f32 %v1249_v47 }
 0x720   :  { %1667 = vrsqrt.f32 %v1281_v48 }
 0x727   :  { %v1662_v38 = vpop.eup %1661 }
 0x728   :  { %v1231_v41 = vmul.f32 %v1662_v38, %v1224_v34  ;;  %v1664_v51 = vpop.eup %1663 }
 0x729   :  { %v1666_v52 = vpop.eup %1665  ;;  %v1267_v56 = vmul.f32 %v1664_v51, %v2308_v11 }
 0x72a   :  { %v1233_v42 = vadd.f32 %v1232_v39, %v1231_v41  ;;  %v1668_v53 = vpop.eup %1667  ;;  %v1251_v57 = vmul.f32 %v1666_v52, %v2310_v12 }
 0x72b   :  { %v1283_v60 = vmul.f32 %v1668_v53, %v2314_v14 }
 0x72c   :  { %v1234_v43 = vmul.f32 %v1233_v42, %v1233_v42 }
 0x72e   :  { %v1236_v44 = vsel %vm1235_vm3, %v1234_v43, 0.0 }
 0x72f   :  { %1237 = vadd.xlane.f32.xlu0 %v1236_v44 }
 0x733   :  { %1296 = vadd.xlane.f32.xlu0 %v1295_v45 }
 0x7bc   :  { %v1238_v49 = vpop.xlane.xlu0 %1237 }
 0x7bd   :  { %1669 = vrsqrt.f32 %v1238_v49 }
 0x7c0   :  { %v1297_v50 = vpop.xlane.xlu0 %1296 }
 0x7c1   :  { %1671 = vrsqrt.f32 %v1297_v50 }
 0x7c7   :  { %v1670_v54 = vpop.eup %1669 }
 0x7c8   :  { %v1240_v55 = vmul.f32 %v1670_v54, %v1233_v42 }
 0x7ca   :  { %v1268_v58 = vmul.f32 %v1267_v56, %v1240_v55  ;;  %v1252_v59 = vmul.f32 %v1251_v57, %v1240_v55  ;;  %v1284_v3 = vmul.f32 %v1283_v60, %v1240_v55 }
 0x7cb   :  { %v1672_v61 = vpop.eup %1671 }
 0x7cc   :  { %v1269_v1 = vsel %vm1235_vm3, %v1268_v58, 0.0  ;;  %v1253_v2 = vsel %vm1235_vm3, %v1252_v59, 0.0  ;;  %v1299_v5 = vmul.f32 %v1672_v61, %v1293_v0  ;;  %v1285_v7 = vsel %vm1235_vm3, %v1284_v3, 0.0 }
 0x7cd   :  { %1270 = vadd.xlane.f32.xlu0 %v1269_v1  ;;  %1254 = vadd.xlane.f32.xlu1 %v1253_v2 }
 0x7ce   :  { %v1300_v6 = vmul.f32 %v1299_v5, %v1240_v55 }
 0x7d0   :  { %v1301_v8 = vsel %vm1235_vm3, %v1300_v6, 0.0 }
 0x7d1   :  { %1286 = vadd.xlane.f32.xlu1 %v1285_v7  ;;  %1302 = vadd.xlane.f32.xlu0 %v1301_v8 }
 0x7d2   :  { %1882 = shalt.err (!%p1879_p6)
}
 0x7d3   :  { %s1883_s11 = scalar_lea.hbm %s2406_s16, 256 }
 0x7d4   :  { %p1884_p7 = scmp.ne.s32.totalorder %s2406_s16, %s1883_s11  ;;  %p1887_p8 = scmp.lt.u32.totalorder %s1883_s11, %s2406_s16 }
 0x7d6   :  { %p1889_p9 = pnand %p1887_p8, %p1884_p7 }
 0x7d8   :  { %1892 = shalt.err (!%p1889_p9)
}
 0x7d9   :  { %1328 = dma.vmem_to_hbm [thread:$0]  %s1323_s13, 256, %s2406_s16, [#allocation20], %s1953_s22, %s1953_s22, %s1954_s23  }
 0x7da   :  { %s1966_s29 = smov [#allocation21]  }
 0x7db   :  { %s1334_s1 = sshll.u32 %s1966_s29, 4  ;;  %s1335_s1 = int_to_ptr.vmem [resolvable:$true] %s1334_s1 }
 0x7dc   :  { %s1893_s4 = scalar_lea.vmem %s1335_s1, 512  ;;  %p1898_p11 = scmp.lt.s32.totalorder %s1335_s1, %s1335_s1 }
 0x7dd   :  { %p1894_p10 = scmp.ne.s32.totalorder %s1335_s1, %s1893_s4  ;;  %p1899_p12 = scmp.lt.s32.totalorder %s1893_s4, %s1893_s4 }
 0x7df   :  { %p1900_p13 = por %p1899_p12, %p1898_p11 }
 0x7e1   :  { %p1901_p0 = pnand %p1900_p13, %p1894_p10 }
 0x7e3   :  { %1904 = shalt.err (!%p1901_p0)
}
 0x7e4   :  { %s1905_s5 = scalar_lea.hbm %s2407_s17, 512 }
 0x7e5   :  { %p1906_p1 = scmp.ne.s32.totalorder %s2407_s17, %s1905_s5  ;;  %p1909_p2 = scmp.lt.u32.totalorder %s1905_s5, %s2407_s17 }
 0x7e7   :  { %p1911_p3 = pnand %p1909_p2, %p1906_p1 }
 0x7e9   :  { %1914 = shalt.err (!%p1911_p3)
}
 0x7ea   :  { %1340 = dma.vmem_to_hbm [thread:$0]  %s1335_s1, 512, %s2407_s17, [#allocation20], %s1953_s22, %s1953_s22, %s1954_s23   ;;  %v1242_v11 = vand.u32 127, %v362_v62 }
 0x7eb   :  { %s1967_s27 = smov [#allocation18]  }
 0x7ec   :  { %vm1256_vm4 = vcmp.eq.s32.totalorder %v1242_v11, 0  ;;  %vm1272_vm5 = vcmp.eq.s32.totalorder %v1242_v11, 1  ;;  %vm1288_vm6 = vcmp.eq.s32.totalorder %v1242_v11, 2  ;;  %s1313_s0 = sshll.u32 %s1967_s27, 4  ;;  %vm1304_vm7 = vcmp.eq.s32.totalorder %v1242_v11, 3  ;;  %s1314_s0 = int_to_ptr.vmem [resolvable:$true] %s1313_s0 }
 0x7ed   :  { %s1915_s15 = scalar_lea.vmem %s1314_s0, 32  ;;  %p1920_p5 = scmp.lt.s32.totalorder %s1314_s0, %s1314_s0 }
 0x7ee   :  { %p1916_p4 = scmp.ne.s32.totalorder %s1314_s0, %s1915_s15  ;;  %p1921_p6 = scmp.lt.s32.totalorder %s1915_s15, %s1915_s15 }
 0x7f0   :  { %p1922_p7 = por %p1921_p6, %p1920_p5 }
 0x7f2   :  { %p1923_p8 = pnand %p1922_p7, %p1916_p4 }
 0x85a   :  { %v1255_v12 = vpop.xlane.xlu1 %1254  ;;  %v1271_v13 = vpop.xlane.xlu0 %1270 }
 0x85b   :  { %v1257_v14 = vsel %vm1256_vm4, %v1255_v12, 0.0 }
 0x85c   :  { %v1273_v15 = vsel %vm1272_vm5, %v1271_v13, %v1257_v14 }
 0x85e   :  { %v1287_v16 = vpop.xlane.xlu1 %1286  ;;  %v1303_v10 = vpop.xlane.xlu0 %1302 }
 0x85f   :  { %v1289_v17 = vsel %vm1288_vm6, %v1287_v16, %v1273_v15 }
 0x860   :  { %v1305_v9 = vsel %vm1304_vm7, %v1303_v10, %v1289_v17 }
 0x861   :  { %1306 = vst [vmem:[#allocation18] sm:$0x3] %v1305_v9 }
 0x862   :  { %1926 = shalt.err (!%p1923_p8)
}
 0x863   :  { %s2416_s23 = sld [smem:[#allocation31_spill]] }
 0x869   :  { %s1927_s28 = scalar_lea.hbm %s2416_s23, 32 }
 0x86a   :  { %p1928_p9 = scmp.ne.s32.totalorder %s2416_s23, %s1927_s28  ;;  %p1931_p10 = scmp.lt.u32.totalorder %s1927_s28, %s2416_s23 }
 0x86c   :  { %p1933_p11 = pnand %p1931_p10, %p1928_p9 }
 0x86e   :  { %1936 = shalt.err (!%p1933_p11)
}
 0x86f   :  { %1316 = dma.vmem_to_hbm [thread:$0]  %s1314_s0, 32, %s2416_s23, [#allocation5]  }
 0x870   :  { %1947 = dma.done.wait [#allocation5], 32  }
 0x871   :  { %1948 = vsyncadd [#allocation5], 4294967264 }
 0x872   :  { %1949 = dma.done.wait [#allocation20], 768  }
 0x873   :  { %1950 = vsyncadd [#allocation20], 4294966528 }
 0x874   :  { %1350 = vsyncpa [#allocation4], 1 }
 0x875   :  { %1351 = vsyncpa [#allocation7], 1 }
 0x876   :  { %1352 = vsyncpa [#allocation10], 1 }
 0x877   :  { %1353 = vsyncpa [#allocation13], 1 }
 0x878   :  { %1354 = vsyncpa [#allocation16], 1 }
 0x879   :  { %1355 = vsyncpa [#allocation5], 1 }
 0x87a   :  { %1356 = vsyncpa [#allocation20], 1 }

</bundles_post_ra>
